<compile_context>
chip_gen: v7x
topology: tpu7x:2x2x1
jax: 0.10.0
libtpu: 0.0.40
codegen_flags: <defaults>
</compile_context>

<pallas_src>
import functools

import jax
import jax.numpy as jnp
from jax import lax
from jax.experimental import pallas as pl
from jax.experimental.pallas import tpu as pltpu


# -----------------------------------------------------------------------------
# Kernel
# -----------------------------------------------------------------------------
def _upsample_conv_kernel(a_ref, h1_ref, h2_ref, w_ref, b_ref, o_ref, xwin_ref):
    """Fused nearest-2x-upsample + 3x3 'same' conv as a 4-phase folded conv.

    a_ref   : (1, T*Wp, 3*Cin)      main strip (T original rows, columns packed into channels)
    h1_ref  : (1, Wp,   3*Cin)      halo row T
    h2_ref  : (1, Wp,   3*Cin)      halo row T+1
    w_ref   : (2, 2, 2, 3*Cin, TCO) folded weights [row_phase, col_phase, row_tap]
    b_ref   : (1, TCO)              bias
    o_ref   : (2, 2, 1, T*Wp, TCO)  4-phase output tile
    xwin_ref: VMEM scratch ((T+2)*Wp, 3*Cin) staging strip + halo
    """
    tw = a_ref.shape[1]          # T * Wp (flattened rows of the strip)
    wp = h1_ref.shape[1]         # Wp     (flattened length of one original row)

    # Stage the (T+2)-row window once per grid step (VMEM-local, sublane-aligned copies) so that
    # every row tap is a static contiguous slice feeding the MXU directly.
    xwin_ref[0:tw, :] = a_ref[0, :, :]
    xwin_ref[tw:tw + wp, :] = h1_ref[0, :, :]
    xwin_ref[tw + wp:tw + 2 * wp, :] = h2_ref[0, :, :]

    bias = b_ref[...].astype(jnp.float32)                     # (1, TCO)

    for p in range(2):                                         # output row phase
        lhs0 = xwin_ref[p * wp:p * wp + tw, :]                 # row tap dr = 0
        lhs1 = xwin_ref[(p + 1) * wp:(p + 1) * wp + tw, :]     # row tap dr = 1
        for q in range(2):                                     # output column phase
            acc = jnp.dot(lhs0, w_ref[p, q, 0, :, :],
                          preferred_element_type=jnp.float32)
            acc = acc + jnp.dot(lhs1, w_ref[p, q, 1, :, :],
                                preferred_element_type=jnp.float32)
            o_ref[p, q, 0, :, :] = (acc + bias).astype(o_ref.dtype)


# -----------------------------------------------------------------------------
# Tiling heuristics
# -----------------------------------------------------------------------------
def _largest_divisor_le(n, cap):
    cap = max(1, min(n, cap))
    for d in range(cap, 0, -1):
        if n % d == 0:
            return d
    return 1


def _pick_tile_co(cout, cin, w_itemsize):
    """Output-channel tile: full Cout when not lane-aligned, else a 128-multiple under budget."""
    if cout % 128 != 0:
        return cout
    budget = 8 << 20                              # resident folded-weight block (bytes)
    for cand in (512, 256, 128):
        if cout % cand == 0 and 8 * 3 * cin * cand * w_itemsize <= budget:
            return cand
    return 128


def _pick_tile_h(h, wp, cin, tco, in_itemsize, out_itemsize):
    """Row-strip height (original rows): the biggest divisor of H keeping blocks VMEM-friendly.

    Large strips amortize the ~0.35us per-grid-step overhead and the halo / input refetches;
    megacore parallelism still comes from the batch and Cout-tile grid axes.
    """
    in_row = wp * 3 * cin * in_itemsize
    out_row = 4 * wp * tco * out_itemsize
    t = min(max(1, (3 << 20) // in_row), max(1, (6 << 20) // out_row), h)
    return _largest_divisor_le(h, t)


# -----------------------------------------------------------------------------
# Wrapper
# -----------------------------------------------------------------------------
@functools.partial(jax.jit, static_argnames=("compute_dtype",))
def upsample2x_conv3x3(x_nchw, w_oihw, bias, *, compute_dtype=None):
    """Nearest-2x upsample followed by Conv2d(Cin, Cout, 3, padding=1). NCHW in / NCHW out."""
    b, cin, h, w = x_nchw.shape
    cout = w_oihw.shape[0]
    out_dtype = x_nchw.dtype
    cdt = jnp.dtype(compute_dtype) if compute_dtype is not None else jnp.dtype(out_dtype)

    # ---- fold upsample + pad + 3x3 taps into per-phase, per-row-tap (3*Cin, Cout) weights ----
    # nearest-2x then 3x3/pad=1 collapses, per output phase, onto 2x2 original pixels:
    #   rows: p=0 -> {r-1: w[0], r: w[1]+w[2]},  p=1 -> {r: w[0]+w[1], r+1: w[2]} (cols likewise)
    w_hwio = jnp.transpose(w_oihw, (2, 3, 1, 0)).astype(jnp.float32)        # (3,3,Cin,Cout)
    row_taps = (((0,), (1, 2)), ((0, 1), (2,)))            # row_taps[p][dr]   -> dh taps
    col_taps = (((0,), (1, 2), ()), ((), (0, 1), (2,)))    # col_taps[q][j]    -> dw taps
    zero = jnp.zeros((cin, cout), jnp.float32)

    def fold(p, q, dr):
        blocks = []
        for j in range(3):                                  # j = which packed column (c, c+1, c+2)
            acc = zero
            for dh in row_taps[p][dr]:
                for dw in col_taps[q][j]:
                    acc = acc + w_hwio[dh, dw]
            blocks.append(acc)
        return jnp.concatenate(blocks, axis=0)              # (3*Cin, Cout)

    wbig = jnp.stack([jnp.stack([jnp.stack([fold(p, q, dr) for dr in range(2)], 0)
                                 for q in range(2)], 0)
                      for p in range(2)], 0).astype(cdt)                    # (2,2,2,3*Cin,Cout)
    bias2d = bias.reshape(1, cout).astype(jnp.float32)

    # ---- column-unfolded, row-flattened input: one cheap pass over the ORIGINAL x ----
    wp = ((w + 7) // 8) * 8                                  # sublane-aligned row length
    x_nhwc = jnp.transpose(x_nchw, (0, 2, 3, 1)).astype(cdt)
    x_p = jnp.pad(x_nhwc, ((0, 0), (1, 1), (1, 1 + (wp - w)), (0, 0)))      # (B, H+2, Wp+2, Cin)
    xflat = jnp.concatenate(
        [x_p[:, :, 0:wp, :], x_p[:, :, 1:wp + 1, :], x_p[:, :, 2:wp + 2, :]],
        axis=-1).reshape(b, (h + 2) * wp, 3 * cin)                          # (B, (H+2)*Wp, 3*Cin)

    # ---- tiling + explicit VMEM budget ----
    in_isz = jnp.dtype(cdt).itemsize
    out_isz = jnp.dtype(out_dtype).itemsize
    tco = _pick_tile_co(cout, cin, in_isz)
    t = _pick_tile_h(h, wp, cin, tco, in_isz, out_isz)
    tw = t * wp
    # Row strips innermost: the folded-weight block (depends only on the Cout-tile axis) is
    # fetched once per (batch, Cout tile) and reused across every row strip.
    grid = (b, cout // tco, h // t)

    block_bytes = (2 * (tw + 2 * wp) * 3 * cin * in_isz      # double-buffered input + halo rows
                   + 2 * 8 * 3 * cin * tco * in_isz          # double-buffered folded weights
                   + 2 * 4 * tw * tco * out_isz              # double-buffered 4-phase output
                   + (tw + 2 * wp) * 3 * cin * in_isz        # staging scratch
                   + 2 * tw * tco * 4)                       # f32 accumulators in flight
    vmem_limit = int(min(max(2 * block_bytes, 32 << 20), 64 << 20))

    out = pl.pallas_call(
        _upsample_conv_kernel,
        out_shape=jax.ShapeDtypeStruct((2, 2, b, h * wp, cout), out_dtype),
        grid_spec=pltpu.PrefetchScalarGridSpec(
            num_scalar_prefetch=0,
            grid=grid,
            in_specs=[
                pl.BlockSpec((1, tw, 3 * cin), lambda bi, co, i: (bi, i, 0)),
                pl.BlockSpec((1, wp, 3 * cin), lambda bi, co, i: (bi, (i + 1) * t, 0)),
                pl.BlockSpec((1, wp, 3 * cin), lambda bi, co, i: (bi, (i + 1) * t + 1, 0)),
                pl.BlockSpec((2, 2, 2, 3 * cin, tco), lambda bi, co, i: (0, 0, 0, 0, co)),
                pl.BlockSpec((1, tco), lambda bi, co, i: (0, co)),
            ],
            out_specs=pl.BlockSpec((2, 2, 1, tw, tco),
                                   lambda bi, co, i: (0, 0, bi, i, co)),
            scratch_shapes=[pltpu.VMEM(((t + 2) * wp, 3 * cin), cdt)],
        ),
        compiler_params=pltpu.CompilerParams(
            dimension_semantics=("parallel", "parallel", "parallel"),
            vmem_limit_bytes=vmem_limit,
        ),
    )(xflat, xflat, xflat, wbig, bias2d)

    # Interleave the 4 phases and return to NCHW: a single fused XLA transpose pass.
    out = out.reshape(2, 2, b, h, wp, cout)[:, :, :, :, :w, :]
    return jnp.transpose(out, (2, 5, 3, 0, 4, 1)).reshape(b, cout, 2 * h, 2 * w)


# -----------------------------------------------------------------------------
# Module
# -----------------------------------------------------------------------------
class Upsample:
    """JAX/Pallas port of the PyTorch Upsample block (nearest-2x + optional 3x3 conv)."""

    def __init__(self, channels, use_conv, key=None):
        self.channels = channels
        self.use_conv = use_conv
        if use_conv:
            if key is None:
                key = jax.random.PRNGKey(42)
            kw, kb = jax.random.split(key)
            fan_in = channels * 3 * 3
            bound = 1.0 / (fan_in ** 0.5)
            # PyTorch Conv2d default init: U(-bound, bound), weight layout OIHW.
            self.w_oihw = jax.random.uniform(kw, (channels, channels, 3, 3),
                                             jnp.float32, -bound, bound)
            self.bias = jax.random.uniform(kb, (channels,), jnp.float32, -bound, bound)

    def __call__(self, x_nchw, compute_dtype=None):
        if not self.use_conv:
            # Pure nearest-2x replication: one fused broadcast+reshape pass, left to XLA.
            b, c, h, w = x_nchw.shape
            return jnp.broadcast_to(x_nchw[:, :, :, None, :, None],
                                    (b, c, h, 2, w, 2)).reshape(b, c, 2 * h, 2 * w)
        return upsample2x_conv3x3(x_nchw, self.w_oihw, self.bias,
                                  compute_dtype=compute_dtype)


# -----------------------------------------------------------------------------
# Pure-JAX reference (mirrors the PyTorch forward pass)
# -----------------------------------------------------------------------------
def _reference(x_nchw, module):
    x_up = jnp.repeat(jnp.repeat(x_nchw, 2, axis=2), 2, axis=3)
    if not module.use_conv:
        return x_up
    y = lax.conv_general_dilated(
        x_up, module.w_oihw, window_strides=(1, 1), padding="SAME",
        dimension_numbers=("NCHW", "OIHW", "NCHW"))
    return y + module.bias[None, :, None, None]


if __name__ == "__main__":
    key = jax.random.PRNGKey(0)
    x = jax.random.normal(key, (2, 4, 16, 16), jnp.float32)       # NCHW, like PyTorch

    # use_conv=True path: fused upsample + folded 3x3 conv Pallas kernel
    up = Upsample(channels=4, use_conv=True, key=jax.random.PRNGKey(1))
    y = jax.block_until_ready(up(x))
    assert y.shape == (2, 4, 32, 32), y.shape
    y_ref = _reference(x, up)
    assert jnp.allclose(y, y_ref, atol=1e-4, rtol=1e-4), \
        float(jnp.max(jnp.abs(y - y_ref)))

    # bf16-operand / f32-accumulation path (MXU-friendly recipe)
    y_bf16 = jax.block_until_ready(up(x, compute_dtype=jnp.bfloat16))
    assert y_bf16.shape == (2, 4, 32, 32)
    assert jnp.allclose(y_bf16, y_ref, atol=0.25, rtol=0.05)

    # use_conv=False path: pure nearest-2x upsample (data movement only)
    up2 = Upsample(channels=4, use_conv=False)
    y2 = jax.block_until_ready(up2(x))
    assert y2.shape == (2, 4, 32, 32)
    assert jnp.allclose(y2, _reference(x, up2))

    print("KERNEL_OK")
</pallas_src>

<mosaic_0001>
module attributes {stable_mosaic.version = 11 : i64} {
  func.func @_upsample_conv_kernel(%arg0: i32, %arg1: i32, %arg2: i32, %arg3: memref<1x256x12xf32, #tpu.memory_space<vmem>>, %arg4: memref<1x16x12xf32, #tpu.memory_space<vmem>>, %arg5: memref<1x16x12xf32, #tpu.memory_space<vmem>>, %arg6: memref<2x2x2x12x4xf32, #tpu.memory_space<vmem>>, %arg7: memref<1x4xf32, #tpu.memory_space<vmem>>, %arg8: memref<2x2x1x256x4xf32, #tpu.memory_space<vmem>>, %arg9: memref<288x12xf32, #tpu.memory_space<vmem>>) attributes {dimension_semantics = [#tpu.dimension_semantics<parallel>, #tpu.dimension_semantics<parallel>, #tpu.dimension_semantics<parallel>], iteration_bounds = array<i64: 2, 1, 1>, scalar_prefetch = 0 : i64, scratch_operands = 1 : i64, tpu.core_type = #tpu.core_type<tc>, window_params = [{transform_indices = @transform_0, window_bounds = array<i64: 1, 256, 12>}, {transform_indices = @transform_1, window_bounds = array<i64: 1, 16, 12>}, {transform_indices = @transform_2, window_bounds = array<i64: 1, 16, 12>}, {transform_indices = @transform_3, window_bounds = array<i64: 2, 2, 2, 12, 4>}, {transform_indices = @transform_4, window_bounds = array<i64: 1, 4>}, {transform_indices = @transform_5, window_bounds = array<i64: 2, 2, 1, 256, 4>}]} {
    %c0 = arith.constant 0 : index
    %c0_0 = arith.constant 0 : index
    %c0_1 = arith.constant 0 : index
    %0 = vector.load %arg3[%c0, %c0_0, %c0_1] : memref<1x256x12xf32, #tpu.memory_space<vmem>>, vector<1x256x12xf32>
    %1 = vector.shape_cast %0 : vector<1x256x12xf32> to vector<256x12xf32>
    %c0_2 = arith.constant 0 : index
    %c0_3 = arith.constant 0 : index
    %2 = vector.load %arg9[%c0_2, %c0_3] : memref<288x12xf32, #tpu.memory_space<vmem>>, vector<256x12xf32>
    tpu.vector_store %arg9[%c0_2, %c0_3], %1 {strides = array<i32>} : memref<288x12xf32, #tpu.memory_space<vmem>>, vector<256x12xf32>,
    %c0_4 = arith.constant 0 : index
    %c0_5 = arith.constant 0 : index
    %c0_6 = arith.constant 0 : index
    %3 = vector.load %arg4[%c0_4, %c0_5, %c0_6] : memref<1x16x12xf32, #tpu.memory_space<vmem>>, vector<1x16x12xf32>
    %4 = vector.shape_cast %3 : vector<1x16x12xf32> to vector<16x12xf32>
    %c256 = arith.constant 256 : index
    %c0_7 = arith.constant 0 : index
    %5 = vector.load %arg9[%c256, %c0_7] : memref<288x12xf32, #tpu.memory_space<vmem>>, vector<16x12xf32>
    tpu.vector_store %arg9[%c256, %c0_7], %4 {strides = array<i32>} : memref<288x12xf32, #tpu.memory_space<vmem>>, vector<16x12xf32>,
    %c0_8 = arith.constant 0 : index
    %c0_9 = arith.constant 0 : index
    %c0_10 = arith.constant 0 : index
    %6 = vector.load %arg5[%c0_8, %c0_9, %c0_10] : memref<1x16x12xf32, #tpu.memory_space<vmem>>, vector<1x16x12xf32>
    %7 = vector.shape_cast %6 : vector<1x16x12xf32> to vector<16x12xf32>
    %c272 = arith.constant 272 : index
    %c0_11 = arith.constant 0 : index
    %8 = vector.load %arg9[%c272, %c0_11] : memref<288x12xf32, #tpu.memory_space<vmem>>, vector<16x12xf32>
    tpu.vector_store %arg9[%c272, %c0_11], %7 {strides = array<i32>} : memref<288x12xf32, #tpu.memory_space<vmem>>, vector<16x12xf32>,
    %c0_12 = arith.constant 0 : index
    %c0_13 = arith.constant 0 : index
    %9 = vector.load %arg7[%c0_12, %c0_13] : memref<1x4xf32, #tpu.memory_space<vmem>>, vector<1x4xf32>
    %c0_14 = arith.constant 0 : index
    %c0_15 = arith.constant 0 : index
    %10 = vector.load %arg9[%c0_14, %c0_15] : memref<288x12xf32, #tpu.memory_space<vmem>>, vector<256x12xf32>
    %c16 = arith.constant 16 : index
    %c0_16 = arith.constant 0 : index
    %11 = vector.load %arg9[%c16, %c0_16] : memref<288x12xf32, #tpu.memory_space<vmem>>, vector<256x12xf32>
    %c0_17 = arith.constant 0 : index
    %c0_18 = arith.constant 0 : index
    %c0_19 = arith.constant 0 : index
    %c0_20 = arith.constant 0 : index
    %c0_21 = arith.constant 0 : index
    %12 = vector.load %arg6[%c0_17, %c0_18, %c0_19, %c0_20, %c0_21] : memref<2x2x2x12x4xf32, #tpu.memory_space<vmem>>, vector<1x1x1x12x4xf32>
    %13 = vector.shape_cast %12 : vector<1x1x1x12x4xf32> to vector<12x4xf32>
    %cst = arith.constant dense<0.000000e+00> : vector<256x4xf32>
    %14 = tpu.matmul %10, %13, %cst {dimension_numbers = #tpu.dot_dimension_numbers<[1], [0], [0], [1], [0, 0, 1, 1], [], []>} : vector<256x12xf32>, vector<12x4xf32>, vector<256x4xf32> -> vector<256x4xf32>
    %c0_22 = arith.constant 0 : index
    %c0_23 = arith.constant 0 : index
    %c1 = arith.constant 1 : index
    %c0_24 = arith.constant 0 : index
    %c0_25 = arith.constant 0 : index
    %15 = vector.load %arg6[%c0_22, %c0_23, %c1, %c0_24, %c0_25] : memref<2x2x2x12x4xf32, #tpu.memory_space<vmem>>, vector<1x1x1x12x4xf32>
    %16 = vector.shape_cast %15 : vector<1x1x1x12x4xf32> to vector<12x4xf32>
    %cst_26 = arith.constant dense<0.000000e+00> : vector<256x4xf32>
    %17 = tpu.matmul %11, %16, %cst_26 {dimension_numbers = #tpu.dot_dimension_numbers<[1], [0], [0], [1], [0, 0, 1, 1], [], []>} : vector<256x12xf32>, vector<12x4xf32>, vector<256x4xf32> -> vector<256x4xf32>
    %18 = arith.addf %14, %17 : vector<256x4xf32>
    %19 = vector.broadcast %9 : vector<1x4xf32> to vector<256x4xf32>
    %20 = arith.addf %18, %19 : vector<256x4xf32>
    %c0_27 = arith.constant 0 : index
    %c0_28 = arith.constant 0 : index
    %c0_29 = arith.constant 0 : index
    %c0_30 = arith.constant 0 : index
    %c0_31 = arith.constant 0 : index
    %21 = vector.load %arg8[%c0_27, %c0_28, %c0_29, %c0_30, %c0_31] : memref<2x2x1x256x4xf32, #tpu.memory_space<vmem>>, vector<1x1x1x256x4xf32>
    %22 = vector.shape_cast %21 : vector<1x1x1x256x4xf32> to vector<256x4xf32>
    %23 = vector.shape_cast %20 : vector<256x4xf32> to vector<1x1x1x256x4xf32>
    tpu.vector_store %arg8[%c0_27, %c0_28, %c0_29, %c0_30, %c0_31], %23 {strides = array<i32>} : memref<2x2x1x256x4xf32, #tpu.memory_space<vmem>>, vector<1x1x1x256x4xf32>,
    %c0_32 = arith.constant 0 : index
    %c1_33 = arith.constant 1 : index
    %c0_34 = arith.constant 0 : index
    %c0_35 = arith.constant 0 : index
    %c0_36 = arith.constant 0 : index
    %24 = vector.load %arg6[%c0_32, %c1_33, %c0_34, %c0_35, %c0_36] : memref<2x2x2x12x4xf32, #tpu.memory_space<vmem>>, vector<1x1x1x12x4xf32>
    %25 = vector.shape_cast %24 : vector<1x1x1x12x4xf32> to vector<12x4xf32>
    %cst_37 = arith.constant dense<0.000000e+00> : vector<256x4xf32>
    %26 = tpu.matmul %10, %25, %cst_37 {dimension_numbers = #tpu.dot_dimension_numbers<[1], [0], [0], [1], [0, 0, 1, 1], [], []>} : vector<256x12xf32>, vector<12x4xf32>, vector<256x4xf32> -> vector<256x4xf32>
    %c0_38 = arith.constant 0 : index
    %c1_39 = arith.constant 1 : index
    %c1_40 = arith.constant 1 : index
    %c0_41 = arith.constant 0 : index
    %c0_42 = arith.constant 0 : index
    %27 = vector.load %arg6[%c0_38, %c1_39, %c1_40, %c0_41, %c0_42] : memref<2x2x2x12x4xf32, #tpu.memory_space<vmem>>, vector<1x1x1x12x4xf32>
    %28 = vector.shape_cast %27 : vector<1x1x1x12x4xf32> to vector<12x4xf32>
    %cst_43 = arith.constant dense<0.000000e+00> : vector<256x4xf32>
    %29 = tpu.matmul %11, %28, %cst_43 {dimension_numbers = #tpu.dot_dimension_numbers<[1], [0], [0], [1], [0, 0, 1, 1], [], []>} : vector<256x12xf32>, vector<12x4xf32>, vector<256x4xf32> -> vector<256x4xf32>
    %30 = arith.addf %26, %29 : vector<256x4xf32>
    %31 = vector.broadcast %9 : vector<1x4xf32> to vector<256x4xf32>
    %32 = arith.addf %30, %31 : vector<256x4xf32>
    %c0_44 = arith.constant 0 : index
    %c1_45 = arith.constant 1 : index
    %c0_46 = arith.constant 0 : index
    %c0_47 = arith.constant 0 : index
    %c0_48 = arith.constant 0 : index
    %33 = vector.load %arg8[%c0_44, %c1_45, %c0_46, %c0_47, %c0_48] : memref<2x2x1x256x4xf32, #tpu.memory_space<vmem>>, vector<1x1x1x256x4xf32>
    %34 = vector.shape_cast %33 : vector<1x1x1x256x4xf32> to vector<256x4xf32>
    %35 = vector.shape_cast %32 : vector<256x4xf32> to vector<1x1x1x256x4xf32>
    tpu.vector_store %arg8[%c0_44, %c1_45, %c0_46, %c0_47, %c0_48], %35 {strides = array<i32>} : memref<2x2x1x256x4xf32, #tpu.memory_space<vmem>>, vector<1x1x1x256x4xf32>,
    %c16_49 = arith.constant 16 : index
    %c0_50 = arith.constant 0 : index
    %36 = vector.load %arg9[%c16_49, %c0_50] : memref<288x12xf32, #tpu.memory_space<vmem>>, vector<256x12xf32>
    %c32 = arith.constant 32 : index
    %c0_51 = arith.constant 0 : index
    %37 = vector.load %arg9[%c32, %c0_51] : memref<288x12xf32, #tpu.memory_space<vmem>>, vector<256x12xf32>
    %c1_52 = arith.constant 1 : index
    %c0_53 = arith.constant 0 : index
    %c0_54 = arith.constant 0 : index
    %c0_55 = arith.constant 0 : index
    %c0_56 = arith.constant 0 : index
    %38 = vector.load %arg6[%c1_52, %c0_53, %c0_54, %c0_55, %c0_56] : memref<2x2x2x12x4xf32, #tpu.memory_space<vmem>>, vector<1x1x1x12x4xf32>
    %39 = vector.shape_cast %38 : vector<1x1x1x12x4xf32> to vector<12x4xf32>
    %cst_57 = arith.constant dense<0.000000e+00> : vector<256x4xf32>
    %40 = tpu.matmul %36, %39, %cst_57 {dimension_numbers = #tpu.dot_dimension_numbers<[1], [0], [0], [1], [0, 0, 1, 1], [], []>} : vector<256x12xf32>, vector<12x4xf32>, vector<256x4xf32> -> vector<256x4xf32>
    %c1_58 = arith.constant 1 : index
    %c0_59 = arith.constant 0 : index
    %c1_60 = arith.constant 1 : index
    %c0_61 = arith.constant 0 : index
    %c0_62 = arith.constant 0 : index
    %41 = vector.load %arg6[%c1_58, %c0_59, %c1_60, %c0_61, %c0_62] : memref<2x2x2x12x4xf32, #tpu.memory_space<vmem>>, vector<1x1x1x12x4xf32>
    %42 = vector.shape_cast %41 : vector<1x1x1x12x4xf32> to vector<12x4xf32>
    %cst_63 = arith.constant dense<0.000000e+00> : vector<256x4xf32>
    %43 = tpu.matmul %37, %42, %cst_63 {dimension_numbers = #tpu.dot_dimension_numbers<[1], [0], [0], [1], [0, 0, 1, 1], [], []>} : vector<256x12xf32>, vector<12x4xf32>, vector<256x4xf32> -> vector<256x4xf32>
    %44 = arith.addf %40, %43 : vector<256x4xf32>
    %45 = vector.broadcast %9 : vector<1x4xf32> to vector<256x4xf32>
    %46 = arith.addf %44, %45 : vector<256x4xf32>
    %c1_64 = arith.constant 1 : index
    %c0_65 = arith.constant 0 : index
    %c0_66 = arith.constant 0 : index
    %c0_67 = arith.constant 0 : index
    %c0_68 = arith.constant 0 : index
    %47 = vector.load %arg8[%c1_64, %c0_65, %c0_66, %c0_67, %c0_68] : memref<2x2x1x256x4xf32, #tpu.memory_space<vmem>>, vector<1x1x1x256x4xf32>
    %48 = vector.shape_cast %47 : vector<1x1x1x256x4xf32> to vector<256x4xf32>
    %49 = vector.shape_cast %46 : vector<256x4xf32> to vector<1x1x1x256x4xf32>
    tpu.vector_store %arg8[%c1_64, %c0_65, %c0_66, %c0_67, %c0_68], %49 {strides = array<i32>} : memref<2x2x1x256x4xf32, #tpu.memory_space<vmem>>, vector<1x1x1x256x4xf32>,
    %c1_69 = arith.constant 1 : index
    %c1_70 = arith.constant 1 : index
    %c0_71 = arith.constant 0 : index
    %c0_72 = arith.constant 0 : index
    %c0_73 = arith.constant 0 : index
    %50 = vector.load %arg6[%c1_69, %c1_70, %c0_71, %c0_72, %c0_73] : memref<2x2x2x12x4xf32, #tpu.memory_space<vmem>>, vector<1x1x1x12x4xf32>
    %51 = vector.shape_cast %50 : vector<1x1x1x12x4xf32> to vector<12x4xf32>
    %cst_74 = arith.constant dense<0.000000e+00> : vector<256x4xf32>
    %52 = tpu.matmul %36, %51, %cst_74 {dimension_numbers = #tpu.dot_dimension_numbers<[1], [0], [0], [1], [0, 0, 1, 1], [], []>} : vector<256x12xf32>, vector<12x4xf32>, vector<256x4xf32> -> vector<256x4xf32>
    %c1_75 = arith.constant 1 : index
    %c1_76 = arith.constant 1 : index
    %c1_77 = arith.constant 1 : index
    %c0_78 = arith.constant 0 : index
    %c0_79 = arith.constant 0 : index
    %53 = vector.load %arg6[%c1_75, %c1_76, %c1_77, %c0_78, %c0_79] : memref<2x2x2x12x4xf32, #tpu.memory_space<vmem>>, vector<1x1x1x12x4xf32>
    %54 = vector.shape_cast %53 : vector<1x1x1x12x4xf32> to vector<12x4xf32>
    %cst_80 = arith.constant dense<0.000000e+00> : vector<256x4xf32>
    %55 = tpu.matmul %37, %54, %cst_80 {dimension_numbers = #tpu.dot_dimension_numbers<[1], [0], [0], [1], [0, 0, 1, 1], [], []>} : vector<256x12xf32>, vector<12x4xf32>, vector<256x4xf32> -> vector<256x4xf32>
    %56 = arith.addf %52, %55 : vector<256x4xf32>
    %57 = vector.broadcast %9 : vector<1x4xf32> to vector<256x4xf32>
    %58 = arith.addf %56, %57 : vector<256x4xf32>
    %c1_81 = arith.constant 1 : index
    %c1_82 = arith.constant 1 : index
    %c0_83 = arith.constant 0 : index
    %c0_84 = arith.constant 0 : index
    %c0_85 = arith.constant 0 : index
    %59 = vector.load %arg8[%c1_81, %c1_82, %c0_83, %c0_84, %c0_85] : memref<2x2x1x256x4xf32, #tpu.memory_space<vmem>>, vector<1x1x1x256x4xf32>
    %60 = vector.shape_cast %59 : vector<1x1x1x256x4xf32> to vector<256x4xf32>
    %61 = vector.shape_cast %58 : vector<256x4xf32> to vector<1x1x1x256x4xf32>
    tpu.vector_store %arg8[%c1_81, %c1_82, %c0_83, %c0_84, %c0_85], %61 {strides = array<i32>} : memref<2x2x1x256x4xf32, #tpu.memory_space<vmem>>, vector<1x1x1x256x4xf32>,
    return
  }
  func.func @transform_0(%arg0: i32, %arg1: i32, %arg2: i32) -> (i32, i32, i32) {
    %c0_i32 = arith.constant 0 : i32
    %c0_i32_0 = arith.constant 0 : i32
    return %arg0, %arg2, %c0_i32 : i32, i32, i32
  }
  func.func @transform_1(%arg0: i32, %arg1: i32, %arg2: i32) -> (i32, i32, i32) {
    %c1_i32 = arith.constant 1 : i32
    %0 = arith.addi %arg2, %c1_i32 : i32
    %c16_i32 = arith.constant 16 : i32
    %1 = arith.muli %0, %c16_i32 : i32
    %c0_i32 = arith.constant 0 : i32
    %c0_i32_0 = arith.constant 0 : i32
    return %arg0, %1, %c0_i32 : i32, i32, i32
  }
  func.func @transform_2(%arg0: i32, %arg1: i32, %arg2: i32) -> (i32, i32, i32) {
    %c1_i32 = arith.constant 1 : i32
    %0 = arith.addi %arg2, %c1_i32 : i32
    %c16_i32 = arith.constant 16 : i32
    %1 = arith.muli %0, %c16_i32 : i32
    %c1_i32_0 = arith.constant 1 : i32
    %2 = arith.addi %1, %c1_i32_0 : i32
    %c0_i32 = arith.constant 0 : i32
    %c0_i32_1 = arith.constant 0 : i32
    return %arg0, %2, %c0_i32 : i32, i32, i32
  }
  func.func @transform_3(%arg0: i32, %arg1: i32, %arg2: i32) -> (i32, i32, i32, i32, i32) {
    %c0_i32 = arith.constant 0 : i32
    %c0_i32_0 = arith.constant 0 : i32
    %c0_i32_1 = arith.constant 0 : i32
    %c0_i32_2 = arith.constant 0 : i32
    %c0_i32_3 = arith.constant 0 : i32
    return %c0_i32, %c0_i32_0, %c0_i32_1, %c0_i32_2, %arg1 : i32, i32, i32, i32, i32
  }
  func.func @transform_4(%arg0: i32, %arg1: i32, %arg2: i32) -> (i32, i32) {
    %c0_i32 = arith.constant 0 : i32
    %c0_i32_0 = arith.constant 0 : i32
    return %c0_i32, %arg1 : i32, i32
  }
  func.func @transform_5(%arg0: i32, %arg1: i32, %arg2: i32) -> (i32, i32, i32, i32, i32) {
    %c0_i32 = arith.constant 0 : i32
    %c0_i32_0 = arith.constant 0 : i32
    %c0_i32_1 = arith.constant 0 : i32
    return %c0_i32, %c0_i32_0, %arg0, %arg2, %arg1 : i32, i32, i32, i32, i32
  }
}

</mosaic_0001>

<bundles_post_ra>
// kernel: upsample2x_conv3x3.1
= control target key start
LH: loop header
LB: loop body
LE: loop exit
PB: predicated region body
PF: predicated region fallthrough
CT: control target
= control target key end

     0   :  { %s4940_s18 = smov 0   ;;  %s4942_s19 = smov 0   ;;  %s6416_s0 = inlined_call_operand.vmem [shape: f32[2,288,12], index: 0, kind: input, shape index: {}, may-alias: {0,1,2}]   ;;  %s6417_s1 = inlined_call_operand.vmem [shape: f32[2,288,12], index: 1, kind: input, shape index: {}, may-alias: {0,1,2}]   ;;  %s6418_s2 = inlined_call_operand.vmem [shape: f32[2,288,12], index: 2, kind: input, shape index: {}, may-alias: {0,1,2}]   ;;  %s6419_s3 = inlined_call_operand.vmem [shape: f32[2,2,2,12,4], index: 3, kind: input, shape index: {}]   ;;  %s6420_s4 = inlined_call_operand.vmem [shape: f32[1,4], index: 4, kind: input, shape index: {}]   ;;  %s6421_s5 = inlined_call_operand.vmem [shape: f32[2,2,2,256,4], index: 5, kind: output, shape index: {}]  }
   0x1   :  { %s4944_s20 = smov 0   ;;  %s4946_s21 = smov 0  }
   0x2   :  { %s4948_s22 = smov 0  }
   0x3 LB: > { %s3565_s23 = sadd.s32 4294967295, %s4907_s22   ;;  %s34_s24 = sadd.s32 1, %s4903_s21  ;;  %s4907_s22 = sphi %s4948_s22, %s15_s22   ;;  %s4903_s21 = sphi %s4946_s21, %s6428_s21   ;;  %s4899_s20 = sphi %s4944_s20, %s6427_s20   ;;  %s4895_s19 = sphi %s4942_s19, %s6426_s19   ;;  %s4891_s18 = sphi %s4940_s18, %s6425_s18  }
   0x4   : > { %p36_p0 = scmp.ge.s32.totalorder %s34_s24, 2  ;;  %s191_s25 = sadd.s32 1, %s4895_s19 }
   0x5   : > { %p201_p1 = scmp.ne.s32.totalorder %s4895_s19, %s4891_s18  ;;  %p202_p2 = scmp.eq.s32.totalorder %s3565_s23, 1 }
   0x6   : > { %s6430_s24 = smov (%p36_p0, %s34_s24), 0  ;;  %p3571_p4 = scmp.ge.s32.totalorder %s4907_s22, 1 }
   0x7   : > { %p4972_p3 = por %p202_p2, %p201_p1  ;;  %s184_s27 = ssub.s32 %s4903_s21, %s6430_s24 }
   0x8   : > { %p296_p5 = scmp.lt.s32.totalorder %s4907_s22, 3  ;;  %p189_p6 = scmp.eq.s32.totalorder %s184_s27, 0 }
   0xa   : > { %p297_p7 = pnand %p3571_p4, %p296_p5 }
   0xb   : > { %s4981_s28 = scalar_select %p189_p6, %s4895_s19, %s191_s25  }
   0xc   : > { %300 = sbr.rel (%p297_p7) target bundleno = 555 (0x22b), region = 40  ;;  %v3576_v0 = vld [vmem:[%s6419_s3 + $0x10] sm:$0xff] (!%p297_p7)  ;;  %v3577_v1 = vld [vmem:[%s6419_s3 + $0x18] sm:$0xf] (!%p297_p7)  ;;  %vm626_vm0 = vcmask (!%p297_p7), 1043456   ;;  %vm4909_vm1 = vmmov (!%p297_p7), 1  }
   0xd   : > { %v3647_v2 = vld [vmem:[%s6419_s3 + $0x30] sm:$0xff] (!%p297_p7)  ;;  %v4649_v3 = vpack.c.bf16 (!%p297_p7), %v3577_v1, %v3576_v0  ;;  %vm4992_vm2 = vmpackc.low (!%p297_p7), %vm626_vm0, %vm4909_vm1  ;;  %v3648_v5 = vld [vmem:[%s6419_s3 + $0x38] sm:$0xf] (!%p297_p7)  ;;  %p366_p8 = scmp.lt.s32.totalorder (!%p297_p7), %s4899_s20, 1  ;;  %vm449_vm3 = vcmask (!%p297_p7), 97280   ;;  %s358_s15 = sand.u32 (!%p297_p7), 1, %s4891_s18  }
   0xe   : > { %v525_v6 = vld [vmem:[%s6419_s3] sm:$0xff] (!%p297_p7)  ;;  %v4661_v7 = vpack.c.bf16 (!%p297_p7), %v3648_v5, %v3647_v2  ;;  %v526_v8 = vld [vmem:[%s6419_s3 + $0x8] sm:$0xf] (!%p297_p7)  ;;  %v3749_v28 = vld [vmem:[%s6419_s3 + $0x50] sm:$0xff] (!%p297_p7)  ;;  %vm1127_vm4 = vcmask (!%p297_p7), 31744  }
   0xf   : > { %v3645_v9 = vld [vmem:[%s6419_s3 + $0x20] sm:$0xff] (!%p297_p7)  ;;  %v3646_v10 = vld [vmem:[%s6419_s3 + $0x28] sm:$0xf] (!%p297_p7)  ;;  %4651 = vmatprep.subr.msk.bf16.mxu0 (!%p297_p7), %vm4992_vm2, %v4649_v3  ;;  %v5015_v11 = vpack.c.bf16 (!%p297_p7), %v526_v8, %v525_v6  ;;  %v3750_v29 = vld [vmem:[%s6419_s3 + $0x58] sm:$0xf] (!%p297_p7) }
  0x10   : > { %v5017_v12 = vpack.c.bf16 (!%p297_p7), %v3646_v10, %v3645_v9  ;;  %4663 = vmatprep.subr.msk.bf16.mxu1 (!%p297_p7), %vm4992_vm2, %v4661_v7  ;;  %4654 = vmatpush3.bf16.msk.msra.mxu0 (!%p297_p7), %vm4992_vm2, %v4649_v3  ;;  %v3851_v30 = vld [vmem:[%s6419_s3 + $0x70] sm:$0xff] (!%p297_p7)  ;;  %v3852_v31 = vld [vmem:[%s6419_s3 + $0x78] sm:$0xf] (!%p297_p7)  ;;  %v5109_v44 = vpack.c.bf16 (!%p297_p7), %v3750_v29, %v3749_v28  ;;  %v3850_v28 = vld [vmem:[%s6419_s3 + $0x68] sm:$0xf] (!%p297_p7) }
  0x11   : > { %4666 = vmatpush3.bf16.msk.msra.mxu1 (!%p297_p7), %vm4992_vm2, %v4661_v7  ;;  %4657 = vmatprep.subr.msk.bf16.mxu0 (!%p297_p7), %vm4992_vm2, %v5015_v11  ;;  %v5111_v45 = vpack.c.bf16 (!%p297_p7), %v3852_v31, %v3851_v30 }
  0x12   : > { %4669 = vmatprep.subr.msk.bf16.mxu1 (!%p297_p7), %vm4992_vm2, %v5017_v12 }
  0x13   : > { %s367_s27 = scalar_select %p366_p8, %s4899_s20, 1 }
  0x15   : > { %s5025_s29 = smul.u32 288, %s367_s27 }
  0x17   : > { %s5037_s7 = scalar_lea.vmem %s6416_s0, %s5025_s29  ;;  %s3957_s16 = sadd.s32 256, %s5025_s29 }
  0x18   : > { %v419_v13 = vld [vmem:[%s5037_s7 + $0x10] sm:$0xff]  ;;  %v420_v14 = vld [vmem:[%s5037_s7 + $0x18] sm:$0xff]  ;;  %v421_v15 = vld [vmem:[%s5037_s7 + $0x20] sm:$0xff]  ;;  %s389_s25 = scalar_lea.vmem %s6417_s1, %s3957_s16  ;;  %s3959_s27 = sadd.s32 272, %s5025_s29 }
  0x19   : > { %452 = vst.msk [vmem:[#allocation2 + $0x10] sm:$0xff] %vm449_vm3, %v419_v13  ;;  %453 = vst.msk [vmem:[#allocation2 + $0x18] sm:$0xff] %vm449_vm3, %v420_v14  ;;  %v422_v16 = vld [vmem:[%s5037_s7 + $0x28] sm:$0xff]  ;;  %v423_v17 = vld [vmem:[%s5037_s7 + $0x30] sm:$0xff]  ;;  %s3572_s16 = sshll.u32 %s358_s15, 10 }
  0x1a   : > { %454 = vst.msk [vmem:[#allocation2 + $0x20] sm:$0xff] %vm449_vm3, %v421_v15  ;;  %v424_v18 = vld [vmem:[%s5037_s7 + $0x38] sm:$0xff]  ;;  %455 = vst.msk [vmem:[#allocation2 + $0x28] sm:$0xff] %vm449_vm3, %v422_v16  ;;  %v425_v19 = vld [vmem:[%s5037_s7 + $0x40] sm:$0xff]  ;;  %s5755_s18 = scalar_lea.vmem [#allocation3], %s3572_s16 }
  0x1b   : > { %456 = vst.msk [vmem:[#allocation2 + $0x30] sm:$0xff] %vm449_vm3, %v423_v17  ;;  %457 = vst.msk [vmem:[#allocation2 + $0x38] sm:$0xff] %vm449_vm3, %v424_v18  ;;  %v426_v20 = vld [vmem:[%s5037_s7 + $0x48] sm:$0xff]  ;;  %v427_v21 = vld [vmem:[%s5037_s7 + $0x50] sm:$0xff] }
  0x1c   : > { %458 = vst.msk [vmem:[#allocation2 + $0x40] sm:$0xff] %vm449_vm3, %v425_v19  ;;  %459 = vst.msk [vmem:[#allocation2 + $0x48] sm:$0xff] %vm449_vm3, %v426_v20  ;;  %v428_v22 = vld [vmem:[%s5037_s7 + $0x58] sm:$0xff]  ;;  %v429_v23 = vld [vmem:[%s5037_s7 + $0x60] sm:$0xff] }
  0x1d   : > { %460 = vst.msk [vmem:[#allocation2 + $0x50] sm:$0xff] %vm449_vm3, %v427_v21  ;;  %v430_v24 = vld [vmem:[%s5037_s7 + $0x68] sm:$0xff]  ;;  %461 = vst.msk [vmem:[#allocation2 + $0x58] sm:$0xff] %vm449_vm3, %v428_v22  ;;  %v431_v25 = vld [vmem:[%s5037_s7 + $0x70] sm:$0xff] }
  0x1e   : > { %462 = vst.msk [vmem:[#allocation2 + $0x60] sm:$0xff] %vm449_vm3, %v429_v23  ;;  %463 = vst.msk [vmem:[#allocation2 + $0x68] sm:$0xff] %vm449_vm3, %v430_v24  ;;  %v432_v26 = vld [vmem:[%s5037_s7 + $0x78] sm:$0xff]  ;;  %v433_v27 = vld [vmem:[%s5037_s7 + $0x80] sm:$0xff] }
  0x1f   : > { %464 = vst.msk [vmem:[#allocation2 + $0x70] sm:$0xff] %vm449_vm3, %v431_v25  ;;  %465 = vst.msk [vmem:[#allocation2 + $0x78] sm:$0xff] %vm449_vm3, %v432_v26  ;;  %v434_v32 = vld [vmem:[%s5037_s7 + $0x88] sm:$0xff]  ;;  %v435_v33 = vld [vmem:[%s5037_s7 + $0x90] sm:$0xff] }
  0x20   : > { %466 = vst.msk [vmem:[#allocation2 + $0x80] sm:$0xff] %vm449_vm3, %v433_v27  ;;  %v436_v34 = vld [vmem:[%s5037_s7 + $0x98] sm:$0xff]  ;;  %467 = vst.msk [vmem:[#allocation2 + $0x88] sm:$0xff] %vm449_vm3, %v434_v32  ;;  %v437_v35 = vld [vmem:[%s5037_s7 + $0xa0] sm:$0xff] }
  0x21   : > { %468 = vst.msk [vmem:[#allocation2 + $0x90] sm:$0xff] %vm449_vm3, %v435_v33  ;;  %469 = vst.msk [vmem:[#allocation2 + $0x98] sm:$0xff] %vm449_vm3, %v436_v34  ;;  %v438_v36 = vld [vmem:[%s5037_s7 + $0xa8] sm:$0xff]  ;;  %v439_v37 = vld [vmem:[%s5037_s7 + $0xb0] sm:$0xff] }
  0x22   : > { %470 = vst.msk [vmem:[#allocation2 + $0xa0] sm:$0xff] %vm449_vm3, %v437_v35  ;;  %471 = vst.msk [vmem:[#allocation2 + $0xa8] sm:$0xff] %vm449_vm3, %v438_v36  ;;  %v440_v38 = vld [vmem:[%s5037_s7 + $0xb8] sm:$0xff]  ;;  %v441_v39 = vld [vmem:[%s5037_s7 + $0xc0] sm:$0xff] }
  0x23   : > { %472 = vst.msk [vmem:[#allocation2 + $0xb0] sm:$0xff] %vm449_vm3, %v439_v37  ;;  %v442_v40 = vld [vmem:[%s5037_s7 + $0xc8] sm:$0xff]  ;;  %v5096_v41 = vld [vmem:[#allocation2 + $0x10] sm:$0xff]  ;;  %v5098_v42 = vld [vmem:[#allocation2 + $0x18] sm:$0xff] }
  0x24   : > { %473 = vst.msk [vmem:[#allocation2 + $0xb8] sm:$0xff] %vm449_vm3, %v440_v38  ;;  %474 = vst.msk [vmem:[#allocation2 + $0xc0] sm:$0xff] %vm449_vm3, %v441_v39  ;;  %4237 = vmatprep.mubr.msk.f32.mxu0 %vm449_vm3, %v5096_v41  ;;  %4341 = vmatprep.mubr.msk.f32.mxu1 %vm449_vm3, %v5096_v41  ;;  %v5107_v43 = vld [vmem:[#allocation2 + $0x20] sm:$0xff]  ;;  %v5123_v46 = vld [vmem:[#allocation2 + $0x28] sm:$0xff] }
  0x25   : > { %475 = vst.msk [vmem:[#allocation2 + $0xc8] sm:$0xff] %vm449_vm3, %v442_v40  ;;  %4238 = vmatmul.mubr.msk.f32.vlgmr.msra.gmra.mrb[0].mxu0 %vm449_vm3, %v5098_v42  ;;  %4342 = vmatmul.mubr.msk.f32.vlgmr.msra.gmra.mrb[0].mxu1 %vm449_vm3, %v5098_v42  ;;  %v5129_v47 = vld [vmem:[#allocation2 + $0x30] sm:$0xff]  ;;  %v5146_v48 = vld [vmem:[#allocation2 + $0x38] sm:$0xff]  ;;  %v5148_v49 = vld [vmem:[#allocation2 + $0x40] sm:$0xff] }
  0x26   : > { %4660 = vmatpush3.bf16.msk.msra.mxu0 %vm4992_vm2, %v5015_v11  ;;  %4672 = vmatpush3.bf16.msk.msra.mxu1 %vm4992_vm2, %v5017_v12  ;;  %v443_v50 = vld [vmem:[%s5037_s7 + $0xd0] sm:$0xff]  ;;  %v444_v51 = vld [vmem:[%s5037_s7 + $0xd8] sm:$0xff]  ;;  %v445_v52 = vld [vmem:[%s5037_s7 + $0xe0] sm:$0xff] }
  0x27   : > { %4240 = vmatprep.mubr.msk.f32.mxu0 %vm449_vm3, %v5107_v43  ;;  %4344 = vmatprep.mubr.msk.f32.mxu1 %vm449_vm3, %v5107_v43  ;;  %476 = vst.msk [vmem:[#allocation2 + $0xd0] sm:$0xff] %vm449_vm3, %v443_v50  ;;  %477 = vst.msk [vmem:[#allocation2 + $0xd8] sm:$0xff] %vm449_vm3, %v444_v51  ;;  %v446_v53 = vld [vmem:[%s5037_s7 + $0xe8] sm:$0xff]  ;;  %v447_v54 = vld [vmem:[%s5037_s7 + $0xf0] sm:$0xff] }
  0x28   : > { %4675 = vmatprep.subr.msk.bf16.mxu0 %vm4992_vm2, %v5109_v44  ;;  %4687 = vmatprep.subr.msk.bf16.mxu1 %vm4992_vm2, %v5111_v45  ;;  %478 = vst.msk [vmem:[#allocation2 + $0xe0] sm:$0xff] %vm449_vm3, %v445_v52  ;;  %v448_v55 = vld [vmem:[%s5037_s7 + $0xf8] sm:$0xff]  ;;  %479 = vst.msk [vmem:[#allocation2 + $0xe8] sm:$0xff] %vm449_vm3, %v446_v53  ;;  %v482_v56 = vld [vmem:[%s389_s25] sm:$0xff] }
  0x29   : > { %4241 = vmatmul.mubr.msk.f32.gmra.mrb[2].mxu0 %vm449_vm3, %v5123_v46  ;;  %4345 = vmatmul.mubr.msk.f32.gmra.mrb[2].mxu1 %vm449_vm3, %v5123_v46  ;;  %480 = vst.msk [vmem:[#allocation2 + $0xf0] sm:$0xff] %vm449_vm3, %v447_v54  ;;  %481 = vst.msk [vmem:[#allocation2 + $0xf8] sm:$0xff] %vm449_vm3, %v448_v55  ;;  %v483_v57 = vld [vmem:[%s389_s25 + $0x8] sm:$0xff]  ;;  %v417_v58 = vld [vmem:[%s5037_s7] sm:$0xff]  ;;  %s3960_s25 = sshll.u32 (%p4972_p3), %s4899_s20, 8 }
  0x2a   : > { %4243 = vmatprep.mubr.msk.f32.mxu0 %vm449_vm3, %v5129_v47  ;;  %4347 = vmatprep.mubr.msk.f32.mxu1 %vm449_vm3, %v5129_v47  ;;  %v5174_v59 = vld [vmem:[#allocation2 + $0x48] sm:$0xff]  ;;  %484 = vst.msk [vmem:[#allocation2 + $0x100] sm:$0xff] %vm449_vm3, %v482_v56  ;;  %485 = vst.msk [vmem:[#allocation2 + $0x108] sm:$0xff] %vm449_vm3, %v483_v57  ;;  %v5180_v61 = vld [vmem:[#allocation2 + $0x50] sm:$0xff]  ;;  %s6146_s6 = scalar_lea.vmem (%p4972_p3), %s6421_s5, %s3960_s25 }
  0x2b   : > { %450 = vst.msk [vmem:[#allocation2] sm:$0xff] %vm449_vm3, %v417_v58  ;;  %v418_v60 = vld [vmem:[%s5037_s7 + $0x8] sm:$0xff]  ;;  %v5191_v62 = vld [vmem:[#allocation2 + $0x58] sm:$0xff]  ;;  %v5193_v63 = vld [vmem:[#allocation2 + $0x60] sm:$0xff]  ;;  %s404_s7 = scalar_lea.vmem %s6418_s2, %s3959_s27 }
  0x2c   : > { %451 = vst.msk [vmem:[#allocation2 + $0x8] sm:$0xff] %vm449_vm3, %v418_v60  ;;  %v5203_v0 = vld [vmem:[#allocation2 + $0x68] sm:$0xff]  ;;  %v5205_v1 = vld [vmem:[#allocation2 + $0x70] sm:$0xff]  ;;  %v5215_v2 = vld [vmem:[#allocation2 + $0x78] sm:$0xff] }
  0x2d   : > { %4244 = vmatmul.mubr.msk.f32.gmra.mrb[4].mxu0 %vm449_vm3, %v5146_v48  ;;  %4348 = vmatmul.mubr.msk.f32.gmra.mrb[4].mxu1 %vm449_vm3, %v5146_v48  ;;  %v5217_v3 = vld [vmem:[#allocation2 + $0x80] sm:$0xff]  ;;  %v5227_v5 = vld [vmem:[#allocation2 + $0x88] sm:$0xff]  ;;  %v5229_v6 = vld [vmem:[#allocation2 + $0x90] sm:$0xff] }
  0x2e   : > { %4246 = vmatprep.mubr.msk.f32.mxu0 %vm449_vm3, %v5148_v49  ;;  %4350 = vmatprep.mubr.msk.f32.mxu1 %vm449_vm3, %v5148_v49  ;;  %v5239_v7 = vld [vmem:[#allocation2 + $0x98] sm:$0xff]  ;;  %v5241_v8 = vld [vmem:[#allocation2 + $0xa0] sm:$0xff]  ;;  %v5251_v9 = vld [vmem:[#allocation2 + $0xa8] sm:$0xff] }
  0x2f   : > { %v5253_v10 = vld [vmem:[#allocation2 + $0xb0] sm:$0xff]  ;;  %v5263_v11 = vld [vmem:[#allocation2 + $0xb8] sm:$0xff]  ;;  %v5265_v12 = vld [vmem:[#allocation2 + $0xc0] sm:$0xff] }
  0x30   : > { %v5275_v13 = vld [vmem:[#allocation2 + $0xc8] sm:$0xff]  ;;  %v5277_v14 = vld [vmem:[#allocation2 + $0xd0] sm:$0xff]  ;;  %v5287_v15 = vld [vmem:[#allocation2 + $0xd8] sm:$0xff] }
  0x31   : > { %4247 = vmatmul.mubr.msk.f32.gmra.mrb[6].mxu0 %vm449_vm3, %v5174_v59  ;;  %4351 = vmatmul.mubr.msk.f32.gmra.mrb[6].mxu1 %vm449_vm3, %v5174_v59  ;;  %v5289_v16 = vld [vmem:[#allocation2 + $0xe0] sm:$0xff]  ;;  %v5300_v17 = vld [vmem:[#allocation2 + $0xe8] sm:$0xff]  ;;  %v5305_v18 = vld [vmem:[#allocation2 + $0xf0] sm:$0xff] }
  0x32   : > { %4249 = vmatprep.mubr.msk.f32.mxu0 %vm449_vm3, %v5180_v61  ;;  %4353 = vmatprep.mubr.msk.f32.mxu1 %vm449_vm3, %v5180_v61  ;;  %v486_v19 = vld [vmem:[%s404_s7] sm:$0xff]  ;;  %v487_v20 = vld [vmem:[%s404_s7 + $0x8] sm:$0xff]  ;;  %v5317_v21 = vld [vmem:[#allocation2 + $0xf8] sm:$0xff] }
  0x33   : > { %488 = vst.msk [vmem:[#allocation2 + $0x110] sm:$0xff] %vm449_vm3, %v486_v19  ;;  %489 = vst.msk [vmem:[#allocation2 + $0x118] sm:$0xff] %vm449_vm3, %v487_v20  ;;  %v5319_v22 = vld [vmem:[#allocation2 + $0x100] sm:$0xff]  ;;  %v5329_v23 = vld [vmem:[#allocation2 + $0x108] sm:$0xff] }
  0x34   : > { %v491_v24 = vld [vmem:[#allocation2] sm:$0xff]  ;;  %v3748_v26 = vld [vmem:[%s6419_s3 + $0x48] sm:$0xf] }
  0x35   : > { %4250 = vmatmul.mubr.msk.f32.gmra.mrb[8].mxu0 %vm449_vm3, %v5191_v62  ;;  %4354 = vmatmul.mubr.msk.f32.gmra.mrb[8].mxu1 %vm449_vm3, %v5191_v62  ;;  %v3747_v25 = vld [vmem:[%s6419_s3 + $0x40] sm:$0xff]  ;;  %v492_v29 = vld [vmem:[#allocation2 + $0x8] sm:$0xff] }
  0x36   : > { %4252 = vmatprep.mubr.msk.f32.mxu0 %vm449_vm3, %v5193_v63  ;;  %4356 = vmatprep.mubr.msk.f32.mxu1 %vm449_vm3, %v5193_v63  ;;  %v3849_v27 = vld [vmem:[%s6419_s3 + $0x60] sm:$0xff]  ;;  %v5349_v30 = vpack.c.bf16 %v3748_v26, %v3747_v25 }
  0x37   : > { %v5351_v31 = vpack.c.bf16 %v3850_v28, %v3849_v27  ;;  %v5749_v33 = vld [vmem:[%s6420_s4] ss:$0 sm:$0xff] }
  0x39   : > { %4253 = vmatmul.mubr.msk.f32.gmra.mrb[10].mxu0 %vm449_vm3, %v5203_v0  ;;  %4357 = vmatmul.mubr.msk.f32.gmra.mrb[10].mxu1 %vm449_vm3, %v5203_v0 }
  0x3a   : > { %4255 = vmatprep.mubr.msk.f32.mxu0 %vm449_vm3, %v5205_v1  ;;  %4359 = vmatprep.mubr.msk.f32.mxu1 %vm449_vm3, %v5205_v1  ;;  %v1719_v4 = vld [vmem:[#allocation2 + $0x110] sm:$0xff]  ;;  %v1720_v32 = vld [vmem:[#allocation2 + $0x118] sm:$0xff] }
  0x3d   : > { %4256 = vmatmul.mubr.msk.f32.gmra.mrb[12].mxu0 %vm449_vm3, %v5215_v2  ;;  %4360 = vmatmul.mubr.msk.f32.gmra.mrb[12].mxu1 %vm449_vm3, %v5215_v2 }
  0x3e   : > { %4258 = vmatprep.mubr.msk.f32.mxu0 %vm449_vm3, %v5217_v3  ;;  %4362 = vmatprep.mubr.msk.f32.mxu1 %vm449_vm3, %v5217_v3 }
  0x41   : > { %4259 = vmatmul.mubr.msk.f32.gmra.mrb[14].mxu0 %vm449_vm3, %v5227_v5  ;;  %4363 = vmatmul.mubr.msk.f32.gmra.mrb[14].mxu1 %vm449_vm3, %v5227_v5 }
  0x42   : > { %4261 = vmatprep.mubr.msk.f32.mxu0 %vm449_vm3, %v5229_v6  ;;  %4365 = vmatprep.mubr.msk.f32.mxu1 %vm449_vm3, %v5229_v6 }
  0x45   : > { %4262 = vmatmul.mubr.msk.f32.gmra.mrb[16].mxu0 %vm449_vm3, %v5239_v7  ;;  %4366 = vmatmul.mubr.msk.f32.gmra.mrb[16].mxu1 %vm449_vm3, %v5239_v7 }
  0x46   : > { %4264 = vmatprep.mubr.msk.f32.mxu0 %vm449_vm3, %v5241_v8  ;;  %4368 = vmatprep.mubr.msk.f32.mxu1 %vm449_vm3, %v5241_v8 }
  0x49   : > { %4265 = vmatmul.mubr.msk.f32.gmra.mrb[18].mxu0 %vm449_vm3, %v5251_v9  ;;  %4369 = vmatmul.mubr.msk.f32.gmra.mrb[18].mxu1 %vm449_vm3, %v5251_v9 }
  0x4a   : > { %4267 = vmatprep.mubr.msk.f32.mxu0 %vm449_vm3, %v5253_v10  ;;  %4371 = vmatprep.mubr.msk.f32.mxu1 %vm449_vm3, %v5253_v10 }
  0x4d   : > { %4268 = vmatmul.mubr.msk.f32.gmra.mrb[20].mxu0 %vm449_vm3, %v5263_v11  ;;  %4372 = vmatmul.mubr.msk.f32.gmra.mrb[20].mxu1 %vm449_vm3, %v5263_v11 }
  0x4e   : > { %4270 = vmatprep.mubr.msk.f32.mxu0 %vm449_vm3, %v5265_v12  ;;  %4374 = vmatprep.mubr.msk.f32.mxu1 %vm449_vm3, %v5265_v12 }
  0x51   : > { %4271 = vmatmul.mubr.msk.f32.gmra.mrb[22].mxu0 %vm449_vm3, %v5275_v13  ;;  %4375 = vmatmul.mubr.msk.f32.gmra.mrb[22].mxu1 %vm449_vm3, %v5275_v13 }
  0x52   : > { %4273 = vmatprep.mubr.msk.f32.mxu0 %vm449_vm3, %v5277_v14  ;;  %4377 = vmatprep.mubr.msk.f32.mxu1 %vm449_vm3, %v5277_v14 }
  0x55   : > { %4274 = vmatmul.mubr.msk.f32.gmra.mrb[24].mxu0 %vm449_vm3, %v5287_v15  ;;  %4378 = vmatmul.mubr.msk.f32.gmra.mrb[24].mxu1 %vm449_vm3, %v5287_v15 }
  0x56   : > { %4276 = vmatprep.mubr.msk.f32.mxu0 %vm449_vm3, %v5289_v16  ;;  %4380 = vmatprep.mubr.msk.f32.mxu1 %vm449_vm3, %v5289_v16 }
  0x59   : > { %4277 = vmatmul.mubr.msk.f32.gmra.mrb[26].mxu0 %vm449_vm3, %v5300_v17  ;;  %4381 = vmatmul.mubr.msk.f32.gmra.mrb[26].mxu1 %vm449_vm3, %v5300_v17 }
  0x5a   : > { %4279 = vmatprep.mubr.msk.f32.mxu0 %vm449_vm3, %v5305_v18  ;;  %4383 = vmatprep.mubr.msk.f32.mxu1 %vm449_vm3, %v5305_v18 }
  0x5d   : > { %4280 = vmatmul.mubr.msk.f32.gmra.mrb[28].mxu0 %vm449_vm3, %v5317_v21  ;;  %4384 = vmatmul.mubr.msk.f32.gmra.mrb[28].mxu1 %vm449_vm3, %v5317_v21 }
  0x5e   : > { %4282 = vmatprep.mubr.msk.f32.mxu0 %vm449_vm3, %v5319_v22  ;;  %4386 = vmatprep.mubr.msk.f32.mxu1 %vm449_vm3, %v5319_v22 }
  0x61   : > { %4283 = vmatmul.mubr.msk.f32.gmra.mrb[30].mxu0 %vm449_vm3, %v5329_v23  ;;  %4387 = vmatmul.mubr.msk.f32.gmra.mrb[30].mxu1 %vm449_vm3, %v5329_v23 }
  0x62   : > { %4289 = vmatprep.mubr.msk.f32.mxu0 %vm449_vm3, %v491_v24  ;;  %4393 = vmatprep.mubr.msk.f32.mxu1 %vm449_vm3, %v491_v24 }
  0x65   : > { %4290 = vmatmul.mubr.msk.f32.vlgmr.msra.gmra.mrb[0].mxu0 %vm449_vm3, %v492_v29  ;;  %4394 = vmatmul.mubr.msk.f32.vlgmr.msra.gmra.mrb[0].mxu1 %vm449_vm3, %v492_v29 }
  0x66   : > { %4678 = vmatpush3.bf16.msk.msra.mxu0 %vm4992_vm2, %v5109_v44  ;;  %4690 = vmatpush3.bf16.msk.msra.mxu1 %vm4992_vm2, %v5111_v45 }
  0x67   : > { %4292 = vmatprep.mubr.msk.f32.mxu0 %vm449_vm3, %v5096_v41  ;;  %4396 = vmatprep.mubr.msk.f32.mxu1 %vm449_vm3, %v5096_v41 }
  0x68   : > { %4681 = vmatprep.subr.msk.bf16.mxu0 %vm4992_vm2, %v5349_v30  ;;  %4693 = vmatprep.subr.msk.bf16.mxu1 %vm4992_vm2, %v5351_v31 }
  0x69   : > { %4293 = vmatmul.mubr.msk.f32.gmra.mrb[2].mxu0 %vm449_vm3, %v5098_v42  ;;  %4397 = vmatmul.mubr.msk.f32.gmra.mrb[2].mxu1 %vm449_vm3, %v5098_v42 }
  0x6a   : > { %4295 = vmatprep.mubr.msk.f32.mxu0 %vm449_vm3, %v5107_v43  ;;  %4399 = vmatprep.mubr.msk.f32.mxu1 %vm449_vm3, %v5107_v43 }
  0x6d   : > { %4296 = vmatmul.mubr.msk.f32.gmra.mrb[4].mxu0 %vm449_vm3, %v5123_v46  ;;  %4400 = vmatmul.mubr.msk.f32.gmra.mrb[4].mxu1 %vm449_vm3, %v5123_v46 }
  0x6e   : > { %4298 = vmatprep.mubr.msk.f32.mxu0 %vm449_vm3, %v5129_v47  ;;  %4402 = vmatprep.mubr.msk.f32.mxu1 %vm449_vm3, %v5129_v47 }
  0x71   : > { %4299 = vmatmul.mubr.msk.f32.gmra.mrb[6].mxu0 %vm449_vm3, %v5146_v48  ;;  %4403 = vmatmul.mubr.msk.f32.gmra.mrb[6].mxu1 %vm449_vm3, %v5146_v48 }
  0x72   : > { %4301 = vmatprep.mubr.msk.f32.mxu0 %vm449_vm3, %v5148_v49  ;;  %4405 = vmatprep.mubr.msk.f32.mxu1 %vm449_vm3, %v5148_v49 }
  0x75   : > { %4302 = vmatmul.mubr.msk.f32.gmra.mrb[8].mxu0 %vm449_vm3, %v5174_v59  ;;  %4406 = vmatmul.mubr.msk.f32.gmra.mrb[8].mxu1 %vm449_vm3, %v5174_v59 }
  0x76   : > { %4304 = vmatprep.mubr.msk.f32.mxu0 %vm449_vm3, %v5180_v61  ;;  %4408 = vmatprep.mubr.msk.f32.mxu1 %vm449_vm3, %v5180_v61 }
  0x79   : > { %4305 = vmatmul.mubr.msk.f32.gmra.mrb[10].mxu0 %vm449_vm3, %v5191_v62  ;;  %4409 = vmatmul.mubr.msk.f32.gmra.mrb[10].mxu1 %vm449_vm3, %v5191_v62 }
  0x7a   : > { %4307 = vmatprep.mubr.msk.f32.mxu0 %vm449_vm3, %v5193_v63  ;;  %4411 = vmatprep.mubr.msk.f32.mxu1 %vm449_vm3, %v5193_v63 }
  0x7d   : > { %4308 = vmatmul.mubr.msk.f32.gmra.mrb[12].mxu0 %vm449_vm3, %v5203_v0  ;;  %4412 = vmatmul.mubr.msk.f32.gmra.mrb[12].mxu1 %vm449_vm3, %v5203_v0 }
  0x7e   : > { %4310 = vmatprep.mubr.msk.f32.mxu0 %vm449_vm3, %v5205_v1  ;;  %4414 = vmatprep.mubr.msk.f32.mxu1 %vm449_vm3, %v5205_v1 }
  0x81   : > { %4311 = vmatmul.mubr.msk.f32.gmra.mrb[14].mxu0 %vm449_vm3, %v5215_v2  ;;  %4415 = vmatmul.mubr.msk.f32.gmra.mrb[14].mxu1 %vm449_vm3, %v5215_v2 }
  0x82   : > { %4313 = vmatprep.mubr.msk.f32.mxu0 %vm449_vm3, %v5217_v3  ;;  %4417 = vmatprep.mubr.msk.f32.mxu1 %vm449_vm3, %v5217_v3 }
  0x85   : > { %4314 = vmatmul.mubr.msk.f32.gmra.mrb[16].mxu0 %vm449_vm3, %v5227_v5  ;;  %4418 = vmatmul.mubr.msk.f32.gmra.mrb[16].mxu1 %vm449_vm3, %v5227_v5 }
  0x86   : > { %4316 = vmatprep.mubr.msk.f32.mxu0 %vm449_vm3, %v5229_v6  ;;  %4420 = vmatprep.mubr.msk.f32.mxu1 %vm449_vm3, %v5229_v6 }
  0x89   : > { %4317 = vmatmul.mubr.msk.f32.gmra.mrb[18].mxu0 %vm449_vm3, %v5239_v7  ;;  %4421 = vmatmul.mubr.msk.f32.gmra.mrb[18].mxu1 %vm449_vm3, %v5239_v7 }
  0x8a   : > { %4319 = vmatprep.mubr.msk.f32.mxu0 %vm449_vm3, %v5241_v8  ;;  %4423 = vmatprep.mubr.msk.f32.mxu1 %vm449_vm3, %v5241_v8 }
  0x8d   : > { %4320 = vmatmul.mubr.msk.f32.gmra.mrb[20].mxu0 %vm449_vm3, %v5251_v9  ;;  %4424 = vmatmul.mubr.msk.f32.gmra.mrb[20].mxu1 %vm449_vm3, %v5251_v9 }
  0x8e   : > { %4322 = vmatprep.mubr.msk.f32.mxu0 %vm449_vm3, %v5253_v10  ;;  %4426 = vmatprep.mubr.msk.f32.mxu1 %vm449_vm3, %v5253_v10 }
  0x91   : > { %4323 = vmatmul.mubr.msk.f32.gmra.mrb[22].mxu0 %vm449_vm3, %v5263_v11  ;;  %4427 = vmatmul.mubr.msk.f32.gmra.mrb[22].mxu1 %vm449_vm3, %v5263_v11 }
  0x92   : > { %4325 = vmatprep.mubr.msk.f32.mxu0 %vm449_vm3, %v5265_v12  ;;  %4429 = vmatprep.mubr.msk.f32.mxu1 %vm449_vm3, %v5265_v12 }
  0x95   : > { %4326 = vmatmul.mubr.msk.f32.gmra.mrb[24].mxu0 %vm449_vm3, %v5275_v13  ;;  %4430 = vmatmul.mubr.msk.f32.gmra.mrb[24].mxu1 %vm449_vm3, %v5275_v13 }
  0x96   : > { %4328 = vmatprep.mubr.msk.f32.mxu0 %vm449_vm3, %v5277_v14  ;;  %4432 = vmatprep.mubr.msk.f32.mxu1 %vm449_vm3, %v5277_v14 }
  0x99   : > { %4329 = vmatmul.mubr.msk.f32.gmra.mrb[26].mxu0 %vm449_vm3, %v5287_v15  ;;  %4433 = vmatmul.mubr.msk.f32.gmra.mrb[26].mxu1 %vm449_vm3, %v5287_v15 }
  0x9a   : > { %4331 = vmatprep.mubr.msk.f32.mxu0 %vm449_vm3, %v5289_v16  ;;  %4435 = vmatprep.mubr.msk.f32.mxu1 %vm449_vm3, %v5289_v16 }
  0x9d   : > { %4332 = vmatmul.mubr.msk.f32.gmra.mrb[28].mxu0 %vm449_vm3, %v5300_v17  ;;  %4436 = vmatmul.mubr.msk.f32.gmra.mrb[28].mxu1 %vm449_vm3, %v5300_v17 }
  0x9e   : > { %4334 = vmatprep.mubr.msk.f32.mxu0 %vm449_vm3, %v5305_v18  ;;  %4438 = vmatprep.mubr.msk.f32.mxu1 %vm449_vm3, %v5305_v18 }
  0xa1   : > { %4335 = vmatmul.mubr.msk.f32.gmra.mrb[30].mxu0 %vm449_vm3, %v5317_v21  ;;  %4439 = vmatmul.mubr.msk.f32.gmra.mrb[30].mxu1 %vm449_vm3, %v5317_v21 }
  0xa2   : > { %4445 = vmatprep.mubr.msk.f32.mxu0 %vm449_vm3, %v5107_v43  ;;  %4549 = vmatprep.mubr.msk.f32.mxu1 %vm449_vm3, %v5107_v43 }
  0xa5   : > { %4446 = vmatmul.mubr.msk.f32.vlgmr.msra.gmra.mrb[32].mxu0 %vm449_vm3, %v5123_v46  ;;  %4550 = vmatmul.mubr.msk.f32.vlgmr.msra.gmra.mrb[32].mxu1 %vm449_vm3, %v5123_v46 }
  0xa6   : > { %4684 = vmatpush3.bf16.msk.msra.mxu0 %vm4992_vm2, %v5349_v30  ;;  %4696 = vmatpush3.bf16.msk.msra.mxu1 %vm4992_vm2, %v5351_v31 }
  0xa7   : > { %4448 = vmatprep.mubr.msk.f32.mxu0 %vm449_vm3, %v5129_v47  ;;  %4552 = vmatprep.mubr.msk.f32.mxu1 %vm449_vm3, %v5129_v47 }
  0xa9   : > { %4449 = vmatmul.mubr.msk.f32.gmra.mrb[34].mxu0 %vm449_vm3, %v5146_v48  ;;  %4553 = vmatmul.mubr.msk.f32.gmra.mrb[34].mxu1 %vm449_vm3, %v5146_v48 }
  0xaa   : > { %4451 = vmatprep.mubr.msk.f32.mxu0 %vm449_vm3, %v5148_v49  ;;  %4555 = vmatprep.mubr.msk.f32.mxu1 %vm449_vm3, %v5148_v49 }
  0xad   : > { %4452 = vmatmul.mubr.msk.f32.gmra.mrb[36].mxu0 %vm449_vm3, %v5174_v59  ;;  %4556 = vmatmul.mubr.msk.f32.gmra.mrb[36].mxu1 %vm449_vm3, %v5174_v59 }
  0xae   : > { %4454 = vmatprep.mubr.msk.f32.mxu0 %vm449_vm3, %v5180_v61  ;;  %4558 = vmatprep.mubr.msk.f32.mxu1 %vm449_vm3, %v5180_v61 }
  0xb1   : > { %4455 = vmatmul.mubr.msk.f32.gmra.mrb[38].mxu0 %vm449_vm3, %v5191_v62  ;;  %4559 = vmatmul.mubr.msk.f32.gmra.mrb[38].mxu1 %vm449_vm3, %v5191_v62 }
  0xb2   : > { %4457 = vmatprep.mubr.msk.f32.mxu0 %vm449_vm3, %v5193_v63  ;;  %4561 = vmatprep.mubr.msk.f32.mxu1 %vm449_vm3, %v5193_v63 }
  0xb5   : > { %4458 = vmatmul.mubr.msk.f32.gmra.mrb[40].mxu0 %vm449_vm3, %v5203_v0  ;;  %4562 = vmatmul.mubr.msk.f32.gmra.mrb[40].mxu1 %vm449_vm3, %v5203_v0 }
  0xb6   : > { %4460 = vmatprep.mubr.msk.f32.mxu0 %vm449_vm3, %v5205_v1  ;;  %4564 = vmatprep.mubr.msk.f32.mxu1 %vm449_vm3, %v5205_v1 }
  0xb9   : > { %4461 = vmatmul.mubr.msk.f32.gmra.mrb[42].mxu0 %vm449_vm3, %v5215_v2  ;;  %4565 = vmatmul.mubr.msk.f32.gmra.mrb[42].mxu1 %vm449_vm3, %v5215_v2 }
  0xba   : > { %4463 = vmatprep.mubr.msk.f32.mxu0 %vm449_vm3, %v5217_v3  ;;  %4567 = vmatprep.mubr.msk.f32.mxu1 %vm449_vm3, %v5217_v3 }
  0xbd   : > { %4464 = vmatmul.mubr.msk.f32.gmra.mrb[44].mxu0 %vm449_vm3, %v5227_v5  ;;  %4568 = vmatmul.mubr.msk.f32.gmra.mrb[44].mxu1 %vm449_vm3, %v5227_v5 }
  0xbe   : > { %4466 = vmatprep.mubr.msk.f32.mxu0 %vm449_vm3, %v5229_v6  ;;  %4570 = vmatprep.mubr.msk.f32.mxu1 %vm449_vm3, %v5229_v6 }
  0xc1   : > { %4467 = vmatmul.mubr.msk.f32.gmra.mrb[46].mxu0 %vm449_vm3, %v5239_v7  ;;  %4571 = vmatmul.mubr.msk.f32.gmra.mrb[46].mxu1 %vm449_vm3, %v5239_v7 }
  0xc2   : > { %4469 = vmatprep.mubr.msk.f32.mxu0 %vm449_vm3, %v5241_v8  ;;  %4573 = vmatprep.mubr.msk.f32.mxu1 %vm449_vm3, %v5241_v8 }
  0xc5   : > { %4470 = vmatmul.mubr.msk.f32.gmra.mrb[48].mxu0 %vm449_vm3, %v5251_v9  ;;  %4574 = vmatmul.mubr.msk.f32.gmra.mrb[48].mxu1 %vm449_vm3, %v5251_v9 }
  0xc6   : > { %4472 = vmatprep.mubr.msk.f32.mxu0 %vm449_vm3, %v5253_v10  ;;  %4576 = vmatprep.mubr.msk.f32.mxu1 %vm449_vm3, %v5253_v10 }
  0xc9   : > { %4473 = vmatmul.mubr.msk.f32.gmra.mrb[50].mxu0 %vm449_vm3, %v5263_v11  ;;  %4577 = vmatmul.mubr.msk.f32.gmra.mrb[50].mxu1 %vm449_vm3, %v5263_v11 }
  0xca   : > { %4475 = vmatprep.mubr.msk.f32.mxu0 %vm449_vm3, %v5265_v12  ;;  %4579 = vmatprep.mubr.msk.f32.mxu1 %vm449_vm3, %v5265_v12 }
  0xcd   : > { %4476 = vmatmul.mubr.msk.f32.gmra.mrb[52].mxu0 %vm449_vm3, %v5275_v13  ;;  %4580 = vmatmul.mubr.msk.f32.gmra.mrb[52].mxu1 %vm449_vm3, %v5275_v13 }
  0xce   : > { %4478 = vmatprep.mubr.msk.f32.mxu0 %vm449_vm3, %v5277_v14  ;;  %4582 = vmatprep.mubr.msk.f32.mxu1 %vm449_vm3, %v5277_v14 }
  0xd1   : > { %4479 = vmatmul.mubr.msk.f32.gmra.mrb[54].mxu0 %vm449_vm3, %v5287_v15  ;;  %4583 = vmatmul.mubr.msk.f32.gmra.mrb[54].mxu1 %vm449_vm3, %v5287_v15 }
  0xd2   : > { %4481 = vmatprep.mubr.msk.f32.mxu0 %vm449_vm3, %v5289_v16  ;;  %4585 = vmatprep.mubr.msk.f32.mxu1 %vm449_vm3, %v5289_v16 }
  0xd5   : > { %4482 = vmatmul.mubr.msk.f32.gmra.mrb[56].mxu0 %vm449_vm3, %v5300_v17  ;;  %4586 = vmatmul.mubr.msk.f32.gmra.mrb[56].mxu1 %vm449_vm3, %v5300_v17 }
  0xd6   : > { %4484 = vmatprep.mubr.msk.f32.mxu0 %vm449_vm3, %v5305_v18  ;;  %4588 = vmatprep.mubr.msk.f32.mxu1 %vm449_vm3, %v5305_v18 }
  0xd9   : > { %4485 = vmatmul.mubr.msk.f32.gmra.mrb[58].mxu0 %vm449_vm3, %v5317_v21  ;;  %4589 = vmatmul.mubr.msk.f32.gmra.mrb[58].mxu1 %vm449_vm3, %v5317_v21 }
  0xda   : > { %4487 = vmatprep.mubr.msk.f32.mxu0 %vm449_vm3, %v5319_v22  ;;  %4591 = vmatprep.mubr.msk.f32.mxu1 %vm449_vm3, %v5319_v22 }
  0xdd   : > { %4488 = vmatmul.mubr.msk.f32.gmra.mrb[60].mxu0 %vm449_vm3, %v5329_v23  ;;  %4592 = vmatmul.mubr.msk.f32.gmra.mrb[60].mxu1 %vm449_vm3, %v5329_v23 }
  0xde   : > { %4490 = vmatprep.mubr.msk.f32.mxu0 %vm449_vm3, %v1719_v4  ;;  %4594 = vmatprep.mubr.msk.f32.mxu1 %vm449_vm3, %v1719_v4 }
  0xe1   : > { %4491 = vmatmul.mubr.msk.f32.gmra.mrb[62].mxu0 %vm449_vm3, %v1720_v32  ;;  %4595 = vmatmul.mubr.msk.f32.gmra.mrb[62].mxu1 %vm449_vm3, %v1720_v32 }
  0xe2   : > { %4497 = vmatprep.mubr.msk.f32.mxu0 %vm449_vm3, %v5096_v41  ;;  %4601 = vmatprep.mubr.msk.f32.mxu1 %vm449_vm3, %v5096_v41 }
  0xe5   : > { %4498 = vmatmul.mubr.msk.f32.vlgmr.msra.gmra.mrb[32].mxu0 %vm449_vm3, %v5098_v42  ;;  %4602 = vmatmul.mubr.msk.f32.vlgmr.msra.gmra.mrb[32].mxu1 %vm449_vm3, %v5098_v42 }
  0xe6   : > { %4500 = vmatprep.mubr.msk.f32.mxu0 %vm449_vm3, %v5107_v43  ;;  %4604 = vmatprep.mubr.msk.f32.mxu1 %vm449_vm3, %v5107_v43 }
  0xe9   : > { %4501 = vmatmul.mubr.msk.f32.gmra.mrb[34].mxu0 %vm449_vm3, %v5123_v46  ;;  %4605 = vmatmul.mubr.msk.f32.gmra.mrb[34].mxu1 %vm449_vm3, %v5123_v46 }
  0xea   : > { %4503 = vmatprep.mubr.msk.f32.mxu0 %vm449_vm3, %v5129_v47  ;;  %4607 = vmatprep.mubr.msk.f32.mxu1 %vm449_vm3, %v5129_v47 }
  0xed   : > { %4504 = vmatmul.mubr.msk.f32.gmra.mrb[36].mxu0 %vm449_vm3, %v5146_v48  ;;  %4608 = vmatmul.mubr.msk.f32.gmra.mrb[36].mxu1 %vm449_vm3, %v5146_v48 }
  0xee   : > { %4506 = vmatprep.mubr.msk.f32.mxu0 %vm449_vm3, %v5148_v49  ;;  %4610 = vmatprep.mubr.msk.f32.mxu1 %vm449_vm3, %v5148_v49 }
  0xf1   : > { %4507 = vmatmul.mubr.msk.f32.gmra.mrb[38].mxu0 %vm449_vm3, %v5174_v59  ;;  %4611 = vmatmul.mubr.msk.f32.gmra.mrb[38].mxu1 %vm449_vm3, %v5174_v59 }
  0xf2   : > { %4509 = vmatprep.mubr.msk.f32.mxu0 %vm449_vm3, %v5180_v61  ;;  %4613 = vmatprep.mubr.msk.f32.mxu1 %vm449_vm3, %v5180_v61 }
  0xf5   : > { %4510 = vmatmul.mubr.msk.f32.gmra.mrb[40].mxu0 %vm449_vm3, %v5191_v62  ;;  %4614 = vmatmul.mubr.msk.f32.gmra.mrb[40].mxu1 %vm449_vm3, %v5191_v62 }
  0xf6   : > { %4512 = vmatprep.mubr.msk.f32.mxu0 %vm449_vm3, %v5193_v63  ;;  %4616 = vmatprep.mubr.msk.f32.mxu1 %vm449_vm3, %v5193_v63 }
  0xf9   : > { %4513 = vmatmul.mubr.msk.f32.gmra.mrb[42].mxu0 %vm449_vm3, %v5203_v0  ;;  %4617 = vmatmul.mubr.msk.f32.gmra.mrb[42].mxu1 %vm449_vm3, %v5203_v0 }
  0xfa   : > { %4515 = vmatprep.mubr.msk.f32.mxu0 %vm449_vm3, %v5205_v1  ;;  %4619 = vmatprep.mubr.msk.f32.mxu1 %vm449_vm3, %v5205_v1 }
  0xfd   : > { %4516 = vmatmul.mubr.msk.f32.gmra.mrb[44].mxu0 %vm449_vm3, %v5215_v2  ;;  %4620 = vmatmul.mubr.msk.f32.gmra.mrb[44].mxu1 %vm449_vm3, %v5215_v2 }
  0xfe   : > { %4518 = vmatprep.mubr.msk.f32.mxu0 %vm449_vm3, %v5217_v3  ;;  %4622 = vmatprep.mubr.msk.f32.mxu1 %vm449_vm3, %v5217_v3 }
 0x101   : > { %4519 = vmatmul.mubr.msk.f32.gmra.mrb[46].mxu0 %vm449_vm3, %v5227_v5  ;;  %4623 = vmatmul.mubr.msk.f32.gmra.mrb[46].mxu1 %vm449_vm3, %v5227_v5 }
 0x102   : > { %4521 = vmatprep.mubr.msk.f32.mxu0 %vm449_vm3, %v5229_v6  ;;  %4625 = vmatprep.mubr.msk.f32.mxu1 %vm449_vm3, %v5229_v6 }
 0x105   : > { %4522 = vmatmul.mubr.msk.f32.gmra.mrb[48].mxu0 %vm449_vm3, %v5239_v7  ;;  %4626 = vmatmul.mubr.msk.f32.gmra.mrb[48].mxu1 %vm449_vm3, %v5239_v7 }
 0x106   : > { %4524 = vmatprep.mubr.msk.f32.mxu0 %vm449_vm3, %v5241_v8  ;;  %4628 = vmatprep.mubr.msk.f32.mxu1 %vm449_vm3, %v5241_v8 }
 0x109   : > { %4525 = vmatmul.mubr.msk.f32.gmra.mrb[50].mxu0 %vm449_vm3, %v5251_v9  ;;  %4629 = vmatmul.mubr.msk.f32.gmra.mrb[50].mxu1 %vm449_vm3, %v5251_v9 }
 0x10a   : > { %4527 = vmatprep.mubr.msk.f32.mxu0 %vm449_vm3, %v5253_v10  ;;  %4631 = vmatprep.mubr.msk.f32.mxu1 %vm449_vm3, %v5253_v10 }
 0x10d   : > { %4528 = vmatmul.mubr.msk.f32.gmra.mrb[52].mxu0 %vm449_vm3, %v5263_v11  ;;  %4632 = vmatmul.mubr.msk.f32.gmra.mrb[52].mxu1 %vm449_vm3, %v5263_v11 }
 0x10e   : > { %4530 = vmatprep.mubr.msk.f32.mxu0 %vm449_vm3, %v5265_v12  ;;  %4634 = vmatprep.mubr.msk.f32.mxu1 %vm449_vm3, %v5265_v12 }
 0x111   : > { %4531 = vmatmul.mubr.msk.f32.gmra.mrb[54].mxu0 %vm449_vm3, %v5275_v13  ;;  %4635 = vmatmul.mubr.msk.f32.gmra.mrb[54].mxu1 %vm449_vm3, %v5275_v13 }
 0x112   : > { %4533 = vmatprep.mubr.msk.f32.mxu0 %vm449_vm3, %v5277_v14  ;;  %4637 = vmatprep.mubr.msk.f32.mxu1 %vm449_vm3, %v5277_v14 }
 0x115   : > { %4534 = vmatmul.mubr.msk.f32.gmra.mrb[56].mxu0 %vm449_vm3, %v5287_v15  ;;  %4638 = vmatmul.mubr.msk.f32.gmra.mrb[56].mxu1 %vm449_vm3, %v5287_v15 }
 0x116   : > { %4536 = vmatprep.mubr.msk.f32.mxu0 %vm449_vm3, %v5289_v16  ;;  %4640 = vmatprep.mubr.msk.f32.mxu1 %vm449_vm3, %v5289_v16 }
 0x119   : > { %4537 = vmatmul.mubr.msk.f32.gmra.mrb[58].mxu0 %vm449_vm3, %v5300_v17  ;;  %4641 = vmatmul.mubr.msk.f32.gmra.mrb[58].mxu1 %vm449_vm3, %v5300_v17 }
 0x11a   : > { %4539 = vmatprep.mubr.msk.f32.mxu0 %vm449_vm3, %v5305_v18  ;;  %4643 = vmatprep.mubr.msk.f32.mxu1 %vm449_vm3, %v5305_v18 }
 0x11d   : > { %4540 = vmatmul.mubr.msk.f32.gmra.mrb[60].mxu0 %vm449_vm3, %v5317_v21  ;;  %4644 = vmatmul.mubr.msk.f32.gmra.mrb[60].mxu1 %vm449_vm3, %v5317_v21 }
 0x11e   : > { %4542 = vmatprep.mubr.msk.f32.mxu0 %vm449_vm3, %v5319_v22  ;;  %4646 = vmatprep.mubr.msk.f32.mxu1 %vm449_vm3, %v5319_v22 }
 0x121   : > { %4543 = vmatmul.mubr.msk.f32.gmra.mrb[62].mxu0 %vm449_vm3, %v5329_v23  ;;  %4647 = vmatmul.mubr.msk.f32.gmra.mrb[62].mxu1 %vm449_vm3, %v5329_v23 }
 0x138   : > { %v4291_v34 = vpop.f32.mrb[0].mxu0  ;;  %v4395_v35 = vpop.f32.mrb[0].mxu1 }
 0x139   : > { %v1096_v36 = vadd.f32 %v4291_v34, %v5749_v33  ;;  %v1623_v37 = vadd.f32 %v4395_v35, %v5749_v33  ;;  %v930_v38 = vpop.f32.mrb[1].mxu0  ;;  %v1463_v39 = vpop.f32.mrb[1].mxu1 }
 0x13a   : > { %v1095_v40 = vadd.f32 %v5749_v33, %v930_v38  ;;  %v1622_v41 = vadd.f32 %v5749_v33, %v1463_v39 }
 0x13b   : > { %1129 = vst.msk [vmem:[%s5755_s18 + $0x8] sm:$0xff] %vm1127_vm4, %v1096_v36  ;;  %3716 = vst.msk [vmem:[%s5755_s18 + $0x108] sm:$0xff] %vm1127_vm4, %v1623_v37 }
 0x13c   : > { %1128 = vst.msk [vmem:[%s5755_s18] sm:$0xff] %vm1127_vm4, %v1095_v40  ;;  %3715 = vst.msk [vmem:[%s5755_s18 + $0x100] sm:$0xff] %vm1127_vm4, %v1622_v41  ;;  %v4294_v42 = vpop.f32.mrb[2].mxu0  ;;  %v4398_v43 = vpop.f32.mrb[2].mxu1 }
 0x13d   : > { %v1098_v44 = vadd.f32 %v4294_v42, %v5749_v33  ;;  %v1625_v45 = vadd.f32 %v4398_v43, %v5749_v33  ;;  %v940_v46 = vpop.f32.mrb[3].mxu0  ;;  %v1473_v47 = vpop.f32.mrb[3].mxu1 }
 0x13e   : > { %v1097_v48 = vadd.f32 %v5749_v33, %v940_v46  ;;  %v1624_v49 = vadd.f32 %v5749_v33, %v1473_v47 }
 0x13f   : > { %1131 = vst.msk [vmem:[%s5755_s18 + $0x18] sm:$0xff] %vm1127_vm4, %v1098_v44  ;;  %3718 = vst.msk [vmem:[%s5755_s18 + $0x118] sm:$0xff] %vm1127_vm4, %v1625_v45 }
 0x140   : > { %1130 = vst.msk [vmem:[%s5755_s18 + $0x10] sm:$0xff] %vm1127_vm4, %v1097_v48  ;;  %3717 = vst.msk [vmem:[%s5755_s18 + $0x110] sm:$0xff] %vm1127_vm4, %v1624_v49  ;;  %v4297_v50 = vpop.f32.mrb[4].mxu0  ;;  %v4401_v51 = vpop.f32.mrb[4].mxu1 }
 0x141   : > { %v1100_v52 = vadd.f32 %v4297_v50, %v5749_v33  ;;  %v1627_v53 = vadd.f32 %v4401_v51, %v5749_v33  ;;  %v950_v54 = vpop.f32.mrb[5].mxu0  ;;  %v1483_v55 = vpop.f32.mrb[5].mxu1 }
 0x142   : > { %v1099_v56 = vadd.f32 %v5749_v33, %v950_v54  ;;  %v1626_v57 = vadd.f32 %v5749_v33, %v1483_v55 }
 0x143   : > { %1133 = vst.msk [vmem:[%s5755_s18 + $0x28] sm:$0xff] %vm1127_vm4, %v1100_v52  ;;  %3720 = vst.msk [vmem:[%s5755_s18 + $0x128] sm:$0xff] %vm1127_vm4, %v1627_v53 }
 0x144   : > { %1132 = vst.msk [vmem:[%s5755_s18 + $0x20] sm:$0xff] %vm1127_vm4, %v1099_v56  ;;  %3719 = vst.msk [vmem:[%s5755_s18 + $0x120] sm:$0xff] %vm1127_vm4, %v1626_v57  ;;  %v4300_v58 = vpop.f32.mrb[6].mxu0  ;;  %v4404_v59 = vpop.f32.mrb[6].mxu1 }
 0x145   : > { %v1102_v60 = vadd.f32 %v4300_v58, %v5749_v33  ;;  %v1629_v61 = vadd.f32 %v4404_v59, %v5749_v33  ;;  %v960_v62 = vpop.f32.mrb[7].mxu0  ;;  %v1493_v63 = vpop.f32.mrb[7].mxu1 }
 0x146   : > { %v1101_v0 = vadd.f32 %v5749_v33, %v960_v62  ;;  %v1628_v1 = vadd.f32 %v5749_v33, %v1493_v63 }
 0x147   : > { %1135 = vst.msk [vmem:[%s5755_s18 + $0x38] sm:$0xff] %vm1127_vm4, %v1102_v60  ;;  %3722 = vst.msk [vmem:[%s5755_s18 + $0x138] sm:$0xff] %vm1127_vm4, %v1629_v61 }
 0x148   : > { %1134 = vst.msk [vmem:[%s5755_s18 + $0x30] sm:$0xff] %vm1127_vm4, %v1101_v0  ;;  %3721 = vst.msk [vmem:[%s5755_s18 + $0x130] sm:$0xff] %vm1127_vm4, %v1628_v1  ;;  %v4303_v2 = vpop.f32.mrb[8].mxu0  ;;  %v4407_v3 = vpop.f32.mrb[8].mxu1 }
 0x149   : > { %v1104_v5 = vadd.f32 %v4303_v2, %v5749_v33  ;;  %v1631_v6 = vadd.f32 %v4407_v3, %v5749_v33  ;;  %v970_v7 = vpop.f32.mrb[9].mxu0  ;;  %v1503_v8 = vpop.f32.mrb[9].mxu1 }
 0x14a   : > { %v1103_v9 = vadd.f32 %v5749_v33, %v970_v7  ;;  %v1630_v10 = vadd.f32 %v5749_v33, %v1503_v8 }
 0x14b   : > { %1137 = vst.msk [vmem:[%s5755_s18 + $0x48] sm:$0xff] %vm1127_vm4, %v1104_v5  ;;  %3724 = vst.msk [vmem:[%s5755_s18 + $0x148] sm:$0xff] %vm1127_vm4, %v1631_v6 }
 0x14c   : > { %1136 = vst.msk [vmem:[%s5755_s18 + $0x40] sm:$0xff] %vm1127_vm4, %v1103_v9  ;;  %3723 = vst.msk [vmem:[%s5755_s18 + $0x140] sm:$0xff] %vm1127_vm4, %v1630_v10  ;;  %v4306_v11 = vpop.f32.mrb[10].mxu0  ;;  %v4410_v12 = vpop.f32.mrb[10].mxu1 }
 0x14d   : > { %v1106_v13 = vadd.f32 %v4306_v11, %v5749_v33  ;;  %v1633_v14 = vadd.f32 %v4410_v12, %v5749_v33  ;;  %v980_v15 = vpop.f32.mrb[11].mxu0  ;;  %v1513_v16 = vpop.f32.mrb[11].mxu1 }
 0x14e   : > { %v1105_v17 = vadd.f32 %v5749_v33, %v980_v15  ;;  %v1632_v18 = vadd.f32 %v5749_v33, %v1513_v16 }
 0x14f   : > { %1139 = vst.msk [vmem:[%s5755_s18 + $0x58] sm:$0xff] %vm1127_vm4, %v1106_v13  ;;  %3726 = vst.msk [vmem:[%s5755_s18 + $0x158] sm:$0xff] %vm1127_vm4, %v1633_v14 }
 0x150   : > { %1138 = vst.msk [vmem:[%s5755_s18 + $0x50] sm:$0xff] %vm1127_vm4, %v1105_v17  ;;  %3725 = vst.msk [vmem:[%s5755_s18 + $0x150] sm:$0xff] %vm1127_vm4, %v1632_v18  ;;  %v4309_v19 = vpop.f32.mrb[12].mxu0  ;;  %v4413_v20 = vpop.f32.mrb[12].mxu1 }
 0x151   : > { %v1108_v21 = vadd.f32 %v4309_v19, %v5749_v33  ;;  %v1635_v22 = vadd.f32 %v4413_v20, %v5749_v33  ;;  %v990_v23 = vpop.f32.mrb[13].mxu0  ;;  %v1523_v24 = vpop.f32.mrb[13].mxu1 }
 0x152   : > { %v1107_v25 = vadd.f32 %v5749_v33, %v990_v23  ;;  %v1634_v26 = vadd.f32 %v5749_v33, %v1523_v24 }
 0x153   : > { %1141 = vst.msk [vmem:[%s5755_s18 + $0x68] sm:$0xff] %vm1127_vm4, %v1108_v21  ;;  %3728 = vst.msk [vmem:[%s5755_s18 + $0x168] sm:$0xff] %vm1127_vm4, %v1635_v22 }
 0x154   : > { %1140 = vst.msk [vmem:[%s5755_s18 + $0x60] sm:$0xff] %vm1127_vm4, %v1107_v25  ;;  %3727 = vst.msk [vmem:[%s5755_s18 + $0x160] sm:$0xff] %vm1127_vm4, %v1634_v26  ;;  %v4312_v27 = vpop.f32.mrb[14].mxu0  ;;  %v4416_v28 = vpop.f32.mrb[14].mxu1 }
 0x155   : > { %v1110_v29 = vadd.f32 %v4312_v27, %v5749_v33  ;;  %v1637_v30 = vadd.f32 %v4416_v28, %v5749_v33  ;;  %v1000_v31 = vpop.f32.mrb[15].mxu0  ;;  %v1533_v4 = vpop.f32.mrb[15].mxu1 }
 0x156   : > { %v1109_v32 = vadd.f32 %v5749_v33, %v1000_v31  ;;  %v1636_v34 = vadd.f32 %v5749_v33, %v1533_v4 }
 0x157   : > { %1143 = vst.msk [vmem:[%s5755_s18 + $0x78] sm:$0xff] %vm1127_vm4, %v1110_v29  ;;  %3730 = vst.msk [vmem:[%s5755_s18 + $0x178] sm:$0xff] %vm1127_vm4, %v1637_v30 }
 0x158   : > { %1142 = vst.msk [vmem:[%s5755_s18 + $0x70] sm:$0xff] %vm1127_vm4, %v1109_v32  ;;  %3729 = vst.msk [vmem:[%s5755_s18 + $0x170] sm:$0xff] %vm1127_vm4, %v1636_v34  ;;  %v4315_v35 = vpop.f32.mrb[16].mxu0  ;;  %v4419_v36 = vpop.f32.mrb[16].mxu1 }
 0x159   : > { %v1112_v37 = vadd.f32 %v4315_v35, %v5749_v33  ;;  %v1639_v38 = vadd.f32 %v4419_v36, %v5749_v33  ;;  %v1010_v39 = vpop.f32.mrb[17].mxu0  ;;  %v1543_v40 = vpop.f32.mrb[17].mxu1 }
 0x15a   : > { %v1111_v41 = vadd.f32 %v5749_v33, %v1010_v39  ;;  %v1638_v42 = vadd.f32 %v5749_v33, %v1543_v40 }
 0x15b   : > { %1145 = vst.msk [vmem:[%s5755_s18 + $0x88] sm:$0xff] %vm1127_vm4, %v1112_v37  ;;  %3732 = vst.msk [vmem:[%s5755_s18 + $0x188] sm:$0xff] %vm1127_vm4, %v1639_v38 }
 0x15c   : > { %1144 = vst.msk [vmem:[%s5755_s18 + $0x80] sm:$0xff] %vm1127_vm4, %v1111_v41  ;;  %3731 = vst.msk [vmem:[%s5755_s18 + $0x180] sm:$0xff] %vm1127_vm4, %v1638_v42  ;;  %v4318_v43 = vpop.f32.mrb[18].mxu0  ;;  %v4422_v44 = vpop.f32.mrb[18].mxu1 }
 0x15d   : > { %v1114_v45 = vadd.f32 %v4318_v43, %v5749_v33  ;;  %v1641_v46 = vadd.f32 %v4422_v44, %v5749_v33  ;;  %v1020_v47 = vpop.f32.mrb[19].mxu0  ;;  %v1553_v48 = vpop.f32.mrb[19].mxu1 }
 0x15e   : > { %v1113_v49 = vadd.f32 %v5749_v33, %v1020_v47  ;;  %v1640_v50 = vadd.f32 %v5749_v33, %v1553_v48 }
 0x15f   : > { %1147 = vst.msk [vmem:[%s5755_s18 + $0x98] sm:$0xff] %vm1127_vm4, %v1114_v45  ;;  %3734 = vst.msk [vmem:[%s5755_s18 + $0x198] sm:$0xff] %vm1127_vm4, %v1641_v46 }
 0x160   : > { %1146 = vst.msk [vmem:[%s5755_s18 + $0x90] sm:$0xff] %vm1127_vm4, %v1113_v49  ;;  %3733 = vst.msk [vmem:[%s5755_s18 + $0x190] sm:$0xff] %vm1127_vm4, %v1640_v50  ;;  %v4321_v51 = vpop.f32.mrb[20].mxu0  ;;  %v4425_v52 = vpop.f32.mrb[20].mxu1 }
 0x161   : > { %v1116_v53 = vadd.f32 %v4321_v51, %v5749_v33  ;;  %v1643_v54 = vadd.f32 %v4425_v52, %v5749_v33  ;;  %v1030_v55 = vpop.f32.mrb[21].mxu0  ;;  %v1563_v56 = vpop.f32.mrb[21].mxu1 }
 0x162   : > { %v1115_v57 = vadd.f32 %v5749_v33, %v1030_v55  ;;  %v1642_v58 = vadd.f32 %v5749_v33, %v1563_v56 }
 0x163   : > { %1149 = vst.msk [vmem:[%s5755_s18 + $0xa8] sm:$0xff] %vm1127_vm4, %v1116_v53  ;;  %3736 = vst.msk [vmem:[%s5755_s18 + $0x1a8] sm:$0xff] %vm1127_vm4, %v1643_v54 }
 0x164   : > { %1148 = vst.msk [vmem:[%s5755_s18 + $0xa0] sm:$0xff] %vm1127_vm4, %v1115_v57  ;;  %3735 = vst.msk [vmem:[%s5755_s18 + $0x1a0] sm:$0xff] %vm1127_vm4, %v1642_v58  ;;  %v4324_v59 = vpop.f32.mrb[22].mxu0  ;;  %v4428_v60 = vpop.f32.mrb[22].mxu1 }
 0x165   : > { %v1118_v61 = vadd.f32 %v4324_v59, %v5749_v33  ;;  %v1645_v62 = vadd.f32 %v4428_v60, %v5749_v33  ;;  %v1040_v63 = vpop.f32.mrb[23].mxu0  ;;  %v1573_v0 = vpop.f32.mrb[23].mxu1 }
 0x166   : > { %v1117_v1 = vadd.f32 %v5749_v33, %v1040_v63  ;;  %v1644_v2 = vadd.f32 %v5749_v33, %v1573_v0 }
 0x167   : > { %1151 = vst.msk [vmem:[%s5755_s18 + $0xb8] sm:$0xff] %vm1127_vm4, %v1118_v61  ;;  %3738 = vst.msk [vmem:[%s5755_s18 + $0x1b8] sm:$0xff] %vm1127_vm4, %v1645_v62 }
 0x168   : > { %1150 = vst.msk [vmem:[%s5755_s18 + $0xb0] sm:$0xff] %vm1127_vm4, %v1117_v1  ;;  %3737 = vst.msk [vmem:[%s5755_s18 + $0x1b0] sm:$0xff] %vm1127_vm4, %v1644_v2  ;;  %v4327_v3 = vpop.f32.mrb[24].mxu0  ;;  %v4431_v5 = vpop.f32.mrb[24].mxu1 }
 0x169   : > { %v1120_v6 = vadd.f32 %v4327_v3, %v5749_v33  ;;  %v1647_v7 = vadd.f32 %v4431_v5, %v5749_v33  ;;  %v1050_v8 = vpop.f32.mrb[25].mxu0  ;;  %v1583_v9 = vpop.f32.mrb[25].mxu1 }
 0x16a   : > { %v1119_v10 = vadd.f32 %v5749_v33, %v1050_v8  ;;  %v1646_v11 = vadd.f32 %v5749_v33, %v1583_v9 }
 0x16b   : > { %1153 = vst.msk [vmem:[%s5755_s18 + $0xc8] sm:$0xff] %vm1127_vm4, %v1120_v6  ;;  %3740 = vst.msk [vmem:[%s5755_s18 + $0x1c8] sm:$0xff] %vm1127_vm4, %v1647_v7 }
 0x16c   : > { %1152 = vst.msk [vmem:[%s5755_s18 + $0xc0] sm:$0xff] %vm1127_vm4, %v1119_v10  ;;  %3739 = vst.msk [vmem:[%s5755_s18 + $0x1c0] sm:$0xff] %vm1127_vm4, %v1646_v11  ;;  %v4330_v12 = vpop.f32.mrb[26].mxu0  ;;  %v4434_v13 = vpop.f32.mrb[26].mxu1 }
 0x16d   : > { %v1122_v14 = vadd.f32 %v4330_v12, %v5749_v33  ;;  %v1649_v15 = vadd.f32 %v4434_v13, %v5749_v33  ;;  %v1060_v16 = vpop.f32.mrb[27].mxu0  ;;  %v1593_v17 = vpop.f32.mrb[27].mxu1 }
 0x16e   : > { %v1121_v18 = vadd.f32 %v5749_v33, %v1060_v16  ;;  %v1648_v19 = vadd.f32 %v5749_v33, %v1593_v17 }
 0x16f   : > { %1155 = vst.msk [vmem:[%s5755_s18 + $0xd8] sm:$0xff] %vm1127_vm4, %v1122_v14  ;;  %3742 = vst.msk [vmem:[%s5755_s18 + $0x1d8] sm:$0xff] %vm1127_vm4, %v1649_v15 }
 0x170   : > { %1154 = vst.msk [vmem:[%s5755_s18 + $0xd0] sm:$0xff] %vm1127_vm4, %v1121_v18  ;;  %3741 = vst.msk [vmem:[%s5755_s18 + $0x1d0] sm:$0xff] %vm1127_vm4, %v1648_v19  ;;  %v4333_v20 = vpop.f32.mrb[28].mxu0  ;;  %v4437_v21 = vpop.f32.mrb[28].mxu1 }
 0x171   : > { %v1124_v22 = vadd.f32 %v4333_v20, %v5749_v33  ;;  %v1651_v23 = vadd.f32 %v4437_v21, %v5749_v33  ;;  %v1070_v24 = vpop.f32.mrb[29].mxu0  ;;  %v1603_v25 = vpop.f32.mrb[29].mxu1 }
 0x172   : > { %v1123_v26 = vadd.f32 %v5749_v33, %v1070_v24  ;;  %v1650_v27 = vadd.f32 %v5749_v33, %v1603_v25 }
 0x173   : > { %1157 = vst.msk [vmem:[%s5755_s18 + $0xe8] sm:$0xff] %vm1127_vm4, %v1124_v22  ;;  %3744 = vst.msk [vmem:[%s5755_s18 + $0x1e8] sm:$0xff] %vm1127_vm4, %v1651_v23 }
 0x174   : > { %1156 = vst.msk [vmem:[%s5755_s18 + $0xe0] sm:$0xff] %vm1127_vm4, %v1123_v26  ;;  %3743 = vst.msk [vmem:[%s5755_s18 + $0x1e0] sm:$0xff] %vm1127_vm4, %v1650_v27  ;;  %v4336_v28 = vpop.f32.mrb[30].mxu0  ;;  %v4440_v29 = vpop.f32.mrb[30].mxu1 }
 0x175   : > { %v1126_v30 = vadd.f32 %v4336_v28, %v5749_v33  ;;  %v1653_v31 = vadd.f32 %v4440_v29, %v5749_v33  ;;  %v1080_v4 = vpop.f32.mrb[31].mxu0  ;;  %v1613_v32 = vpop.f32.mrb[31].mxu1 }
 0x176   : > { %v1125_v34 = vadd.f32 %v5749_v33, %v1080_v4  ;;  %v1652_v35 = vadd.f32 %v5749_v33, %v1613_v32 }
 0x177   : > { %1159 = vst.msk [vmem:[%s5755_s18 + $0xf8] sm:$0xff] %vm1127_vm4, %v1126_v30  ;;  %3746 = vst.msk [vmem:[%s5755_s18 + $0x1f8] sm:$0xff] %vm1127_vm4, %v1653_v31 }
 0x178   : > { %1158 = vst.msk [vmem:[%s5755_s18 + $0xf0] sm:$0xff] %vm1127_vm4, %v1125_v34  ;;  %3745 = vst.msk [vmem:[%s5755_s18 + $0x1f0] sm:$0xff] %vm1127_vm4, %v1652_v35 }
 0x1b8   : > { %v4499_v36 = vpop.f32.mrb[32].mxu0  ;;  %v4603_v37 = vpop.f32.mrb[32].mxu1 }
 0x1b9   : > { %v2286_v38 = vadd.f32 %v4499_v36, %v5749_v33  ;;  %v2813_v39 = vadd.f32 %v4603_v37, %v5749_v33  ;;  %v2126_v40 = vpop.f32.mrb[33].mxu0  ;;  %v2653_v41 = vpop.f32.mrb[33].mxu1 }
 0x1ba   : > { %v2285_v42 = vadd.f32 %v5749_v33, %v2126_v40  ;;  %v2812_v43 = vadd.f32 %v5749_v33, %v2653_v41 }
 0x1bb   : > { %3818 = vst.msk [vmem:[%s5755_s18 + $0x208] sm:$0xff] %vm1127_vm4, %v2286_v38  ;;  %3920 = vst.msk [vmem:[%s5755_s18 + $0x308] sm:$0xff] %vm1127_vm4, %v2813_v39 }
 0x1bc   : > { %3817 = vst.msk [vmem:[%s5755_s18 + $0x200] sm:$0xff] %vm1127_vm4, %v2285_v42  ;;  %3919 = vst.msk [vmem:[%s5755_s18 + $0x300] sm:$0xff] %vm1127_vm4, %v2812_v43  ;;  %v4502_v44 = vpop.f32.mrb[34].mxu0  ;;  %v4606_v45 = vpop.f32.mrb[34].mxu1 }
 0x1bd   : > { %v2288_v46 = vadd.f32 %v4502_v44, %v5749_v33  ;;  %v2815_v47 = vadd.f32 %v4606_v45, %v5749_v33  ;;  %v2136_v48 = vpop.f32.mrb[35].mxu0  ;;  %v2663_v49 = vpop.f32.mrb[35].mxu1 }
 0x1be   : > { %v2287_v50 = vadd.f32 %v5749_v33, %v2136_v48  ;;  %v2814_v51 = vadd.f32 %v5749_v33, %v2663_v49 }
 0x1bf   : > { %3820 = vst.msk [vmem:[%s5755_s18 + $0x218] sm:$0xff] %vm1127_vm4, %v2288_v46  ;;  %3922 = vst.msk [vmem:[%s5755_s18 + $0x318] sm:$0xff] %vm1127_vm4, %v2815_v47 }
 0x1c0   : > { %3819 = vst.msk [vmem:[%s5755_s18 + $0x210] sm:$0xff] %vm1127_vm4, %v2287_v50  ;;  %3921 = vst.msk [vmem:[%s5755_s18 + $0x310] sm:$0xff] %vm1127_vm4, %v2814_v51  ;;  %v4505_v52 = vpop.f32.mrb[36].mxu0  ;;  %v4609_v53 = vpop.f32.mrb[36].mxu1 }
 0x1c1   : > { %v2290_v54 = vadd.f32 %v4505_v52, %v5749_v33  ;;  %v2817_v55 = vadd.f32 %v4609_v53, %v5749_v33  ;;  %v2146_v56 = vpop.f32.mrb[37].mxu0  ;;  %v2673_v57 = vpop.f32.mrb[37].mxu1 }
 0x1c2   : > { %v2289_v58 = vadd.f32 %v5749_v33, %v2146_v56  ;;  %v2816_v59 = vadd.f32 %v5749_v33, %v2673_v57 }
 0x1c3   : > { %3822 = vst.msk [vmem:[%s5755_s18 + $0x228] sm:$0xff] %vm1127_vm4, %v2290_v54  ;;  %3924 = vst.msk [vmem:[%s5755_s18 + $0x328] sm:$0xff] %vm1127_vm4, %v2817_v55 }
 0x1c4   : > { %3821 = vst.msk [vmem:[%s5755_s18 + $0x220] sm:$0xff] %vm1127_vm4, %v2289_v58  ;;  %3923 = vst.msk [vmem:[%s5755_s18 + $0x320] sm:$0xff] %vm1127_vm4, %v2816_v59  ;;  %v4508_v60 = vpop.f32.mrb[38].mxu0  ;;  %v4612_v61 = vpop.f32.mrb[38].mxu1 }
 0x1c5   : > { %v2292_v62 = vadd.f32 %v4508_v60, %v5749_v33  ;;  %v2819_v63 = vadd.f32 %v4612_v61, %v5749_v33  ;;  %v2156_v0 = vpop.f32.mrb[39].mxu0  ;;  %v2683_v1 = vpop.f32.mrb[39].mxu1 }
 0x1c6   : > { %v2291_v2 = vadd.f32 %v5749_v33, %v2156_v0  ;;  %v2818_v3 = vadd.f32 %v5749_v33, %v2683_v1 }
 0x1c7   : > { %3824 = vst.msk [vmem:[%s5755_s18 + $0x238] sm:$0xff] %vm1127_vm4, %v2292_v62  ;;  %3926 = vst.msk [vmem:[%s5755_s18 + $0x338] sm:$0xff] %vm1127_vm4, %v2819_v63 }
 0x1c8   : > { %3823 = vst.msk [vmem:[%s5755_s18 + $0x230] sm:$0xff] %vm1127_vm4, %v2291_v2  ;;  %3925 = vst.msk [vmem:[%s5755_s18 + $0x330] sm:$0xff] %vm1127_vm4, %v2818_v3  ;;  %v4511_v5 = vpop.f32.mrb[40].mxu0  ;;  %v4615_v6 = vpop.f32.mrb[40].mxu1 }
 0x1c9   : > { %v2294_v7 = vadd.f32 %v4511_v5, %v5749_v33  ;;  %v2821_v8 = vadd.f32 %v4615_v6, %v5749_v33  ;;  %v2166_v9 = vpop.f32.mrb[41].mxu0  ;;  %v2693_v10 = vpop.f32.mrb[41].mxu1 }
 0x1ca   : > { %v2293_v11 = vadd.f32 %v5749_v33, %v2166_v9  ;;  %v2820_v12 = vadd.f32 %v5749_v33, %v2693_v10 }
 0x1cb   : > { %3826 = vst.msk [vmem:[%s5755_s18 + $0x248] sm:$0xff] %vm1127_vm4, %v2294_v7  ;;  %3928 = vst.msk [vmem:[%s5755_s18 + $0x348] sm:$0xff] %vm1127_vm4, %v2821_v8 }
 0x1cc   : > { %3825 = vst.msk [vmem:[%s5755_s18 + $0x240] sm:$0xff] %vm1127_vm4, %v2293_v11  ;;  %3927 = vst.msk [vmem:[%s5755_s18 + $0x340] sm:$0xff] %vm1127_vm4, %v2820_v12  ;;  %v4514_v13 = vpop.f32.mrb[42].mxu0  ;;  %v4618_v14 = vpop.f32.mrb[42].mxu1 }
 0x1cd   : > { %v2296_v15 = vadd.f32 %v4514_v13, %v5749_v33  ;;  %v2823_v16 = vadd.f32 %v4618_v14, %v5749_v33  ;;  %v2176_v17 = vpop.f32.mrb[43].mxu0  ;;  %v2703_v18 = vpop.f32.mrb[43].mxu1 }
 0x1ce   : > { %v2295_v19 = vadd.f32 %v5749_v33, %v2176_v17  ;;  %v2822_v20 = vadd.f32 %v5749_v33, %v2703_v18 }
 0x1cf   : > { %3828 = vst.msk [vmem:[%s5755_s18 + $0x258] sm:$0xff] %vm1127_vm4, %v2296_v15  ;;  %3930 = vst.msk [vmem:[%s5755_s18 + $0x358] sm:$0xff] %vm1127_vm4, %v2823_v16 }
 0x1d0   : > { %3827 = vst.msk [vmem:[%s5755_s18 + $0x250] sm:$0xff] %vm1127_vm4, %v2295_v19  ;;  %3929 = vst.msk [vmem:[%s5755_s18 + $0x350] sm:$0xff] %vm1127_vm4, %v2822_v20  ;;  %v4517_v21 = vpop.f32.mrb[44].mxu0  ;;  %v4621_v22 = vpop.f32.mrb[44].mxu1 }
 0x1d1   : > { %v2298_v23 = vadd.f32 %v4517_v21, %v5749_v33  ;;  %v2825_v24 = vadd.f32 %v4621_v22, %v5749_v33  ;;  %v2186_v25 = vpop.f32.mrb[45].mxu0  ;;  %v2713_v26 = vpop.f32.mrb[45].mxu1 }
 0x1d2   : > { %v2297_v27 = vadd.f32 %v5749_v33, %v2186_v25  ;;  %v2824_v28 = vadd.f32 %v5749_v33, %v2713_v26 }
 0x1d3   : > { %3830 = vst.msk [vmem:[%s5755_s18 + $0x268] sm:$0xff] %vm1127_vm4, %v2298_v23  ;;  %3932 = vst.msk [vmem:[%s5755_s18 + $0x368] sm:$0xff] %vm1127_vm4, %v2825_v24 }
 0x1d4   : > { %3829 = vst.msk [vmem:[%s5755_s18 + $0x260] sm:$0xff] %vm1127_vm4, %v2297_v27  ;;  %3931 = vst.msk [vmem:[%s5755_s18 + $0x360] sm:$0xff] %vm1127_vm4, %v2824_v28  ;;  %v4520_v29 = vpop.f32.mrb[46].mxu0  ;;  %v4624_v30 = vpop.f32.mrb[46].mxu1 }
 0x1d5   : > { %v2300_v31 = vadd.f32 %v4520_v29, %v5749_v33  ;;  %v2827_v4 = vadd.f32 %v4624_v30, %v5749_v33  ;;  %v2196_v32 = vpop.f32.mrb[47].mxu0  ;;  %v2723_v34 = vpop.f32.mrb[47].mxu1 }
 0x1d6   : > { %v2299_v35 = vadd.f32 %v5749_v33, %v2196_v32  ;;  %v2826_v36 = vadd.f32 %v5749_v33, %v2723_v34 }
 0x1d7   : > { %3832 = vst.msk [vmem:[%s5755_s18 + $0x278] sm:$0xff] %vm1127_vm4, %v2300_v31  ;;  %3934 = vst.msk [vmem:[%s5755_s18 + $0x378] sm:$0xff] %vm1127_vm4, %v2827_v4 }
 0x1d8   : > { %3831 = vst.msk [vmem:[%s5755_s18 + $0x270] sm:$0xff] %vm1127_vm4, %v2299_v35  ;;  %3933 = vst.msk [vmem:[%s5755_s18 + $0x370] sm:$0xff] %vm1127_vm4, %v2826_v36  ;;  %v4523_v37 = vpop.f32.mrb[48].mxu0  ;;  %v4627_v38 = vpop.f32.mrb[48].mxu1 }
 0x1d9   : > { %v2302_v39 = vadd.f32 %v4523_v37, %v5749_v33  ;;  %v2829_v40 = vadd.f32 %v4627_v38, %v5749_v33  ;;  %v2206_v41 = vpop.f32.mrb[49].mxu0  ;;  %v2733_v42 = vpop.f32.mrb[49].mxu1  ;;  %v3173_v38 = vld [vmem:[%s5755_s18 + $0x8] sm:$0xff] (%p4972_p3) }
 0x1da   : > { %v2301_v43 = vadd.f32 %v5749_v33, %v2206_v41  ;;  %v2828_v44 = vadd.f32 %v5749_v33, %v2733_v42  ;;  %v3179_v41 = vld [vmem:[%s5755_s18 + $0x20] sm:$0xff] (%p4972_p3)  ;;  %v3181_v42 = vld [vmem:[%s5755_s18 + $0x28] sm:$0xff] (%p4972_p3)  ;;  %3174 = vst [vmem:[%s6146_s6 + $0x8] sm:$0xff] (%p4972_p3), %v3173_v38 }
 0x1db   : > { %3834 = vst.msk [vmem:[%s5755_s18 + $0x288] sm:$0xff] %vm1127_vm4, %v2302_v39  ;;  %3936 = vst.msk [vmem:[%s5755_s18 + $0x388] sm:$0xff] %vm1127_vm4, %v2829_v40  ;;  %v3175_v39 = vld [vmem:[%s5755_s18 + $0x10] sm:$0xff] (%p4972_p3)  ;;  %v3177_v40 = vld [vmem:[%s5755_s18 + $0x18] sm:$0xff] (%p4972_p3) }
 0x1dc   : > { %3833 = vst.msk [vmem:[%s5755_s18 + $0x280] sm:$0xff] %vm1127_vm4, %v2301_v43  ;;  %3935 = vst.msk [vmem:[%s5755_s18 + $0x380] sm:$0xff] %vm1127_vm4, %v2828_v44  ;;  %v4526_v45 = vpop.f32.mrb[50].mxu0  ;;  %v4630_v46 = vpop.f32.mrb[50].mxu1  ;;  %v3183_v43 = vld [vmem:[%s5755_s18 + $0x30] sm:$0xff] (%p4972_p3)  ;;  %v3185_v44 = vld [vmem:[%s5755_s18 + $0x38] sm:$0xff] (%p4972_p3) }
 0x1dd   : > { %v2304_v47 = vadd.f32 %v4526_v45, %v5749_v33  ;;  %v2831_v48 = vadd.f32 %v4630_v46, %v5749_v33  ;;  %v2216_v49 = vpop.f32.mrb[51].mxu0  ;;  %v2743_v50 = vpop.f32.mrb[51].mxu1  ;;  %3176 = vst [vmem:[%s6146_s6 + $0x10] sm:$0xff] (%p4972_p3), %v3175_v39  ;;  %3178 = vst [vmem:[%s6146_s6 + $0x18] sm:$0xff] (%p4972_p3), %v3177_v40  ;;  %v3187_v45 = vld [vmem:[%s5755_s18 + $0x40] sm:$0xff] (%p4972_p3)  ;;  %v3189_v46 = vld [vmem:[%s5755_s18 + $0x48] sm:$0xff] (%p4972_p3) }
 0x1de   : > { %v2303_v51 = vadd.f32 %v5749_v33, %v2216_v49  ;;  %v2830_v52 = vadd.f32 %v5749_v33, %v2743_v50  ;;  %3180 = vst [vmem:[%s6146_s6 + $0x20] sm:$0xff] (%p4972_p3), %v3179_v41  ;;  %3182 = vst [vmem:[%s6146_s6 + $0x28] sm:$0xff] (%p4972_p3), %v3181_v42  ;;  %v3195_v49 = vld [vmem:[%s5755_s18 + $0x60] sm:$0xff] (%p4972_p3)  ;;  %v3197_v50 = vld [vmem:[%s5755_s18 + $0x68] sm:$0xff] (%p4972_p3) }
 0x1df   : > { %3836 = vst.msk [vmem:[%s5755_s18 + $0x298] sm:$0xff] %vm1127_vm4, %v2304_v47  ;;  %3938 = vst.msk [vmem:[%s5755_s18 + $0x398] sm:$0xff] %vm1127_vm4, %v2831_v48  ;;  %v3191_v47 = vld [vmem:[%s5755_s18 + $0x50] sm:$0xff] (%p4972_p3)  ;;  %v3193_v48 = vld [vmem:[%s5755_s18 + $0x58] sm:$0xff] (%p4972_p3) }
 0x1e0   : > { %3835 = vst.msk [vmem:[%s5755_s18 + $0x290] sm:$0xff] %vm1127_vm4, %v2303_v51  ;;  %3937 = vst.msk [vmem:[%s5755_s18 + $0x390] sm:$0xff] %vm1127_vm4, %v2830_v52  ;;  %v4529_v53 = vpop.f32.mrb[52].mxu0  ;;  %v4633_v54 = vpop.f32.mrb[52].mxu1  ;;  %v3199_v51 = vld [vmem:[%s5755_s18 + $0x70] sm:$0xff] (%p4972_p3)  ;;  %v3201_v52 = vld [vmem:[%s5755_s18 + $0x78] sm:$0xff] (%p4972_p3) }
 0x1e1   : > { %v2306_v55 = vadd.f32 %v4529_v53, %v5749_v33  ;;  %v2833_v56 = vadd.f32 %v4633_v54, %v5749_v33  ;;  %v2226_v57 = vpop.f32.mrb[53].mxu0  ;;  %v2753_v58 = vpop.f32.mrb[53].mxu1  ;;  %3184 = vst [vmem:[%s6146_s6 + $0x30] sm:$0xff] (%p4972_p3), %v3183_v43  ;;  %3186 = vst [vmem:[%s6146_s6 + $0x38] sm:$0xff] (%p4972_p3), %v3185_v44  ;;  %v3203_v53 = vld [vmem:[%s5755_s18 + $0x80] sm:$0xff] (%p4972_p3)  ;;  %v3205_v54 = vld [vmem:[%s5755_s18 + $0x88] sm:$0xff] (%p4972_p3) }
 0x1e2   : > { %v2305_v59 = vadd.f32 %v5749_v33, %v2226_v57  ;;  %v2832_v60 = vadd.f32 %v5749_v33, %v2753_v58  ;;  %3188 = vst [vmem:[%s6146_s6 + $0x40] sm:$0xff] (%p4972_p3), %v3187_v45  ;;  %3190 = vst [vmem:[%s6146_s6 + $0x48] sm:$0xff] (%p4972_p3), %v3189_v46  ;;  %v3211_v57 = vld [vmem:[%s5755_s18 + $0xa0] sm:$0xff] (%p4972_p3)  ;;  %v3213_v58 = vld [vmem:[%s5755_s18 + $0xa8] sm:$0xff] (%p4972_p3) }
 0x1e3   : > { %3838 = vst.msk [vmem:[%s5755_s18 + $0x2a8] sm:$0xff] %vm1127_vm4, %v2306_v55  ;;  %3940 = vst.msk [vmem:[%s5755_s18 + $0x3a8] sm:$0xff] %vm1127_vm4, %v2833_v56  ;;  %v3207_v55 = vld [vmem:[%s5755_s18 + $0x90] sm:$0xff] (%p4972_p3)  ;;  %v3209_v56 = vld [vmem:[%s5755_s18 + $0x98] sm:$0xff] (%p4972_p3) }
 0x1e4   : > { %3837 = vst.msk [vmem:[%s5755_s18 + $0x2a0] sm:$0xff] %vm1127_vm4, %v2305_v59  ;;  %3939 = vst.msk [vmem:[%s5755_s18 + $0x3a0] sm:$0xff] %vm1127_vm4, %v2832_v60  ;;  %v4532_v61 = vpop.f32.mrb[54].mxu0  ;;  %v4636_v62 = vpop.f32.mrb[54].mxu1  ;;  %v3215_v59 = vld [vmem:[%s5755_s18 + $0xb0] sm:$0xff] (%p4972_p3)  ;;  %v3217_v60 = vld [vmem:[%s5755_s18 + $0xb8] sm:$0xff] (%p4972_p3) }
 0x1e5   : > { %v2308_v63 = vadd.f32 %v4532_v61, %v5749_v33  ;;  %v2835_v0 = vadd.f32 %v4636_v62, %v5749_v33  ;;  %v2236_v1 = vpop.f32.mrb[55].mxu0  ;;  %v2763_v2 = vpop.f32.mrb[55].mxu1  ;;  %3192 = vst [vmem:[%s6146_s6 + $0x50] sm:$0xff] (%p4972_p3), %v3191_v47  ;;  %3194 = vst [vmem:[%s6146_s6 + $0x58] sm:$0xff] (%p4972_p3), %v3193_v48  ;;  %v3219_v61 = vld [vmem:[%s5755_s18 + $0xc0] sm:$0xff] (%p4972_p3)  ;;  %v3221_v62 = vld [vmem:[%s5755_s18 + $0xc8] sm:$0xff] (%p4972_p3) }
 0x1e6   : > { %v2307_v3 = vadd.f32 %v5749_v33, %v2236_v1  ;;  %v2834_v5 = vadd.f32 %v5749_v33, %v2763_v2  ;;  %3196 = vst [vmem:[%s6146_s6 + $0x60] sm:$0xff] (%p4972_p3), %v3195_v49  ;;  %3198 = vst [vmem:[%s6146_s6 + $0x68] sm:$0xff] (%p4972_p3), %v3197_v50  ;;  %v3227_v1 = vld [vmem:[%s5755_s18 + $0xe0] sm:$0xff] (%p4972_p3)  ;;  %v3229_v2 = vld [vmem:[%s5755_s18 + $0xe8] sm:$0xff] (%p4972_p3) }
 0x1e7   : > { %3840 = vst.msk [vmem:[%s5755_s18 + $0x2b8] sm:$0xff] %vm1127_vm4, %v2308_v63  ;;  %3942 = vst.msk [vmem:[%s5755_s18 + $0x3b8] sm:$0xff] %vm1127_vm4, %v2835_v0  ;;  %v3223_v63 = vld [vmem:[%s5755_s18 + $0xd0] sm:$0xff] (%p4972_p3)  ;;  %v3225_v0 = vld [vmem:[%s5755_s18 + $0xd8] sm:$0xff] (%p4972_p3) }
 0x1e8   : > { %3839 = vst.msk [vmem:[%s5755_s18 + $0x2b0] sm:$0xff] %vm1127_vm4, %v2307_v3  ;;  %3941 = vst.msk [vmem:[%s5755_s18 + $0x3b0] sm:$0xff] %vm1127_vm4, %v2834_v5  ;;  %v4535_v6 = vpop.f32.mrb[56].mxu0  ;;  %v4639_v7 = vpop.f32.mrb[56].mxu1  ;;  %v3231_v3 = vld [vmem:[%s5755_s18 + $0xf0] sm:$0xff] (%p4972_p3)  ;;  %v3233_v5 = vld [vmem:[%s5755_s18 + $0xf8] sm:$0xff] (%p4972_p3) }
 0x1e9   : > { %v2310_v8 = vadd.f32 %v4535_v6, %v5749_v33  ;;  %v2837_v9 = vadd.f32 %v4639_v7, %v5749_v33  ;;  %v2246_v10 = vpop.f32.mrb[57].mxu0  ;;  %v2773_v11 = vpop.f32.mrb[57].mxu1  ;;  %3200 = vst [vmem:[%s6146_s6 + $0x70] sm:$0xff] (%p4972_p3), %v3199_v51  ;;  %3202 = vst [vmem:[%s6146_s6 + $0x78] sm:$0xff] (%p4972_p3), %v3201_v52  ;;  %v3235_v6 = vld [vmem:[%s5755_s18 + $0x100] sm:$0xff] (%p4972_p3)  ;;  %v3237_v7 = vld [vmem:[%s5755_s18 + $0x108] sm:$0xff] (%p4972_p3) }
 0x1ea   : > { %v2309_v12 = vadd.f32 %v5749_v33, %v2246_v10  ;;  %v2836_v13 = vadd.f32 %v5749_v33, %v2773_v11  ;;  %3204 = vst [vmem:[%s6146_s6 + $0x80] sm:$0xff] (%p4972_p3), %v3203_v53  ;;  %3206 = vst [vmem:[%s6146_s6 + $0x88] sm:$0xff] (%p4972_p3), %v3205_v54  ;;  %v3243_v10 = vld [vmem:[%s5755_s18 + $0x120] sm:$0xff] (%p4972_p3)  ;;  %v3245_v11 = vld [vmem:[%s5755_s18 + $0x128] sm:$0xff] (%p4972_p3) }
 0x1eb   : > { %3842 = vst.msk [vmem:[%s5755_s18 + $0x2c8] sm:$0xff] %vm1127_vm4, %v2310_v8  ;;  %3944 = vst.msk [vmem:[%s5755_s18 + $0x3c8] sm:$0xff] %vm1127_vm4, %v2837_v9  ;;  %v3239_v8 = vld [vmem:[%s5755_s18 + $0x110] sm:$0xff] (%p4972_p3)  ;;  %v3241_v9 = vld [vmem:[%s5755_s18 + $0x118] sm:$0xff] (%p4972_p3) }
 0x1ec   : > { %3841 = vst.msk [vmem:[%s5755_s18 + $0x2c0] sm:$0xff] %vm1127_vm4, %v2309_v12  ;;  %3943 = vst.msk [vmem:[%s5755_s18 + $0x3c0] sm:$0xff] %vm1127_vm4, %v2836_v13  ;;  %v4538_v14 = vpop.f32.mrb[58].mxu0  ;;  %v4642_v15 = vpop.f32.mrb[58].mxu1  ;;  %v3247_v12 = vld [vmem:[%s5755_s18 + $0x130] sm:$0xff] (%p4972_p3)  ;;  %v3249_v13 = vld [vmem:[%s5755_s18 + $0x138] sm:$0xff] (%p4972_p3) }
 0x1ed   : > { %v2312_v16 = vadd.f32 %v4538_v14, %v5749_v33  ;;  %v2839_v17 = vadd.f32 %v4642_v15, %v5749_v33  ;;  %v2256_v18 = vpop.f32.mrb[59].mxu0  ;;  %v2783_v19 = vpop.f32.mrb[59].mxu1  ;;  %3208 = vst [vmem:[%s6146_s6 + $0x90] sm:$0xff] (%p4972_p3), %v3207_v55  ;;  %3210 = vst [vmem:[%s6146_s6 + $0x98] sm:$0xff] (%p4972_p3), %v3209_v56  ;;  %v3251_v14 = vld [vmem:[%s5755_s18 + $0x140] sm:$0xff] (%p4972_p3)  ;;  %v3253_v15 = vld [vmem:[%s5755_s18 + $0x148] sm:$0xff] (%p4972_p3) }
 0x1ee   : > { %v2311_v20 = vadd.f32 %v5749_v33, %v2256_v18  ;;  %v2838_v21 = vadd.f32 %v5749_v33, %v2783_v19  ;;  %3212 = vst [vmem:[%s6146_s6 + $0xa0] sm:$0xff] (%p4972_p3), %v3211_v57  ;;  %3214 = vst [vmem:[%s6146_s6 + $0xa8] sm:$0xff] (%p4972_p3), %v3213_v58  ;;  %v3259_v18 = vld [vmem:[%s5755_s18 + $0x160] sm:$0xff] (%p4972_p3)  ;;  %v3261_v19 = vld [vmem:[%s5755_s18 + $0x168] sm:$0xff] (%p4972_p3) }
 0x1ef   : > { %3844 = vst.msk [vmem:[%s5755_s18 + $0x2d8] sm:$0xff] %vm1127_vm4, %v2312_v16  ;;  %3946 = vst.msk [vmem:[%s5755_s18 + $0x3d8] sm:$0xff] %vm1127_vm4, %v2839_v17  ;;  %v3255_v16 = vld [vmem:[%s5755_s18 + $0x150] sm:$0xff] (%p4972_p3)  ;;  %v3257_v17 = vld [vmem:[%s5755_s18 + $0x158] sm:$0xff] (%p4972_p3) }
 0x1f0   : > { %3843 = vst.msk [vmem:[%s5755_s18 + $0x2d0] sm:$0xff] %vm1127_vm4, %v2311_v20  ;;  %3945 = vst.msk [vmem:[%s5755_s18 + $0x3d0] sm:$0xff] %vm1127_vm4, %v2838_v21  ;;  %v4541_v22 = vpop.f32.mrb[60].mxu0  ;;  %v4645_v23 = vpop.f32.mrb[60].mxu1  ;;  %v3263_v20 = vld [vmem:[%s5755_s18 + $0x170] sm:$0xff] (%p4972_p3)  ;;  %v3265_v21 = vld [vmem:[%s5755_s18 + $0x178] sm:$0xff] (%p4972_p3) }
 0x1f1   : > { %v2314_v24 = vadd.f32 %v4541_v22, %v5749_v33  ;;  %v2841_v25 = vadd.f32 %v4645_v23, %v5749_v33  ;;  %v2266_v26 = vpop.f32.mrb[61].mxu0  ;;  %v2793_v27 = vpop.f32.mrb[61].mxu1  ;;  %3216 = vst [vmem:[%s6146_s6 + $0xb0] sm:$0xff] (%p4972_p3), %v3215_v59  ;;  %3218 = vst [vmem:[%s6146_s6 + $0xb8] sm:$0xff] (%p4972_p3), %v3217_v60  ;;  %v3267_v22 = vld [vmem:[%s5755_s18 + $0x180] sm:$0xff] (%p4972_p3)  ;;  %v3269_v23 = vld [vmem:[%s5755_s18 + $0x188] sm:$0xff] (%p4972_p3) }
 0x1f2   : > { %v2313_v28 = vadd.f32 %v5749_v33, %v2266_v26  ;;  %v2840_v29 = vadd.f32 %v5749_v33, %v2793_v27  ;;  %2883 = sbr.rel (!%p4972_p3) target bundleno = 555 (0x22b), region = 44  ;;  %3220 = vst [vmem:[%s6146_s6 + $0xc0] sm:$0xff] (%p4972_p3), %v3219_v61  ;;  %3222 = vst [vmem:[%s6146_s6 + $0xc8] sm:$0xff] (%p4972_p3), %v3221_v62  ;;  %v3275_v26 = vld [vmem:[%s5755_s18 + $0x1a0] sm:$0xff] (%p4972_p3)  ;;  %v3277_v27 = vld [vmem:[%s5755_s18 + $0x1a8] sm:$0xff] (%p4972_p3) }
 0x1f3   : > { %3846 = vst.msk [vmem:[%s5755_s18 + $0x2e8] sm:$0xff] %vm1127_vm4, %v2314_v24  ;;  %3948 = vst.msk [vmem:[%s5755_s18 + $0x3e8] sm:$0xff] %vm1127_vm4, %v2841_v25  ;;  %v3271_v24 = vld [vmem:[%s5755_s18 + $0x190] sm:$0xff] (%p4972_p3)  ;;  %v3273_v25 = vld [vmem:[%s5755_s18 + $0x198] sm:$0xff] (%p4972_p3) }
 0x1f4   : > { %3845 = vst.msk [vmem:[%s5755_s18 + $0x2e0] sm:$0xff] %vm1127_vm4, %v2313_v28  ;;  %3947 = vst.msk [vmem:[%s5755_s18 + $0x3e0] sm:$0xff] %vm1127_vm4, %v2840_v29  ;;  %v4544_v30 = vpop.f32.mrb[62].mxu0  ;;  %v4648_v31 = vpop.f32.mrb[62].mxu1  ;;  %v3279_v28 = vld [vmem:[%s5755_s18 + $0x1b0] sm:$0xff] (%p4972_p3)  ;;  %v3281_v29 = vld [vmem:[%s5755_s18 + $0x1b8] sm:$0xff] (%p4972_p3) }
 0x1f5   : > { %v2316_v4 = vadd.f32 %v4544_v30, %v5749_v33  ;;  %v2843_v32 = vadd.f32 %v4648_v31, %v5749_v33  ;;  %v2276_v34 = vpop.f32.mrb[63].mxu0  ;;  %v2803_v35 = vpop.f32.mrb[63].mxu1  ;;  %3224 = vst [vmem:[%s6146_s6 + $0xd0] sm:$0xff] (%p4972_p3), %v3223_v63  ;;  %3226 = vst [vmem:[%s6146_s6 + $0xd8] sm:$0xff] (%p4972_p3), %v3225_v0  ;;  %v3283_v30 = vld [vmem:[%s5755_s18 + $0x1c0] sm:$0xff] (%p4972_p3)  ;;  %v3285_v31 = vld [vmem:[%s5755_s18 + $0x1c8] sm:$0xff] (%p4972_p3) }
 0x1f6   : > { %v2315_v36 = vadd.f32 %v5749_v33, %v2276_v34  ;;  %v2842_v37 = vadd.f32 %v5749_v33, %v2803_v35  ;;  %v3171_v33 = vld [vmem:[%s5755_s18] sm:$0xff] (%p4972_p3)  ;;  %3228 = vst [vmem:[%s6146_s6 + $0xe0] sm:$0xff] (%p4972_p3), %v3227_v1  ;;  %3230 = vst [vmem:[%s6146_s6 + $0xe8] sm:$0xff] (%p4972_p3), %v3229_v2  ;;  %v3293_v35 = vld [vmem:[%s5755_s18 + $0x1e8] sm:$0xff] (%p4972_p3) }
 0x1f7   : > { %3848 = vst.msk [vmem:[%s5755_s18 + $0x2f8] sm:$0xff] %vm1127_vm4, %v2316_v4  ;;  %3950 = vst.msk [vmem:[%s5755_s18 + $0x3f8] sm:$0xff] %vm1127_vm4, %v2843_v32  ;;  %v3287_v4 = vld [vmem:[%s5755_s18 + $0x1d0] sm:$0xff] (%p4972_p3)  ;;  %v3289_v32 = vld [vmem:[%s5755_s18 + $0x1d8] sm:$0xff] (%p4972_p3) }
 0x1f8   : > { %3847 = vst.msk [vmem:[%s5755_s18 + $0x2f0] sm:$0xff] %vm1127_vm4, %v2315_v36  ;;  %3949 = vst.msk [vmem:[%s5755_s18 + $0x3f0] sm:$0xff] %vm1127_vm4, %v2842_v37  ;;  %v3291_v34 = vld [vmem:[%s5755_s18 + $0x1e0] sm:$0xff] (%p4972_p3)  ;;  %v3295_v36 = vld [vmem:[%s5755_s18 + $0x1f0] sm:$0xff] (%p4972_p3) }
 0x1f9   : > { %3172 = vst [vmem:[%s6146_s6] sm:$0xff] %v3171_v33  ;;  %3232 = vst [vmem:[%s6146_s6 + $0xf0] sm:$0xff] %v3231_v3  ;;  %v3297_v37 = vld [vmem:[%s5755_s18 + $0x1f8] sm:$0xff]  ;;  %v3299_v33 = vld [vmem:[%s5755_s18 + $0x200] sm:$0xff] }
 0x1fa   : > { %3234 = vst [vmem:[%s6146_s6 + $0xf8] sm:$0xff] %v3233_v5  ;;  %3236 = vst [vmem:[%s6146_s6 + $0x200] sm:$0xff] %v3235_v6  ;;  %v3301_v38 = vld [vmem:[%s5755_s18 + $0x208] sm:$0xff]  ;;  %v3303_v39 = vld [vmem:[%s5755_s18 + $0x210] sm:$0xff] }
 0x1fb   : > { %3238 = vst [vmem:[%s6146_s6 + $0x208] sm:$0xff] %v3237_v7  ;;  %3240 = vst [vmem:[%s6146_s6 + $0x210] sm:$0xff] %v3239_v8  ;;  %v3305_v40 = vld [vmem:[%s5755_s18 + $0x218] sm:$0xff]  ;;  %v3307_v41 = vld [vmem:[%s5755_s18 + $0x220] sm:$0xff] }
 0x1fc   : > { %3242 = vst [vmem:[%s6146_s6 + $0x218] sm:$0xff] %v3241_v9  ;;  %3244 = vst [vmem:[%s6146_s6 + $0x220] sm:$0xff] %v3243_v10  ;;  %v3309_v42 = vld [vmem:[%s5755_s18 + $0x228] sm:$0xff]  ;;  %v3311_v43 = vld [vmem:[%s5755_s18 + $0x230] sm:$0xff] }
 0x1fd   : > { %3246 = vst [vmem:[%s6146_s6 + $0x228] sm:$0xff] %v3245_v11  ;;  %3248 = vst [vmem:[%s6146_s6 + $0x230] sm:$0xff] %v3247_v12  ;;  %v3313_v44 = vld [vmem:[%s5755_s18 + $0x238] sm:$0xff]  ;;  %v3315_v45 = vld [vmem:[%s5755_s18 + $0x240] sm:$0xff] }
 0x1fe   : > { %3250 = vst [vmem:[%s6146_s6 + $0x238] sm:$0xff] %v3249_v13  ;;  %3252 = vst [vmem:[%s6146_s6 + $0x240] sm:$0xff] %v3251_v14  ;;  %v3317_v46 = vld [vmem:[%s5755_s18 + $0x248] sm:$0xff]  ;;  %v3319_v47 = vld [vmem:[%s5755_s18 + $0x250] sm:$0xff] }
 0x1ff   : > { %3254 = vst [vmem:[%s6146_s6 + $0x248] sm:$0xff] %v3253_v15  ;;  %3256 = vst [vmem:[%s6146_s6 + $0x250] sm:$0xff] %v3255_v16  ;;  %v3321_v48 = vld [vmem:[%s5755_s18 + $0x258] sm:$0xff]  ;;  %v3323_v49 = vld [vmem:[%s5755_s18 + $0x260] sm:$0xff] }
 0x200   : > { %3258 = vst [vmem:[%s6146_s6 + $0x258] sm:$0xff] %v3257_v17  ;;  %3260 = vst [vmem:[%s6146_s6 + $0x260] sm:$0xff] %v3259_v18  ;;  %v3325_v50 = vld [vmem:[%s5755_s18 + $0x268] sm:$0xff]  ;;  %v3327_v51 = vld [vmem:[%s5755_s18 + $0x270] sm:$0xff] }
 0x201   : > { %3262 = vst [vmem:[%s6146_s6 + $0x268] sm:$0xff] %v3261_v19  ;;  %3264 = vst [vmem:[%s6146_s6 + $0x270] sm:$0xff] %v3263_v20  ;;  %v3329_v52 = vld [vmem:[%s5755_s18 + $0x278] sm:$0xff]  ;;  %v3331_v53 = vld [vmem:[%s5755_s18 + $0x280] sm:$0xff] }
 0x202   : > { %3266 = vst [vmem:[%s6146_s6 + $0x278] sm:$0xff] %v3265_v21  ;;  %3268 = vst [vmem:[%s6146_s6 + $0x280] sm:$0xff] %v3267_v22  ;;  %v3333_v54 = vld [vmem:[%s5755_s18 + $0x288] sm:$0xff]  ;;  %v3335_v55 = vld [vmem:[%s5755_s18 + $0x290] sm:$0xff] }
 0x203   : > { %3270 = vst [vmem:[%s6146_s6 + $0x288] sm:$0xff] %v3269_v23  ;;  %3272 = vst [vmem:[%s6146_s6 + $0x290] sm:$0xff] %v3271_v24  ;;  %v3337_v56 = vld [vmem:[%s5755_s18 + $0x298] sm:$0xff]  ;;  %v3339_v57 = vld [vmem:[%s5755_s18 + $0x2a0] sm:$0xff] }
 0x204   : > { %3274 = vst [vmem:[%s6146_s6 + $0x298] sm:$0xff] %v3273_v25  ;;  %3276 = vst [vmem:[%s6146_s6 + $0x2a0] sm:$0xff] %v3275_v26  ;;  %v3341_v58 = vld [vmem:[%s5755_s18 + $0x2a8] sm:$0xff]  ;;  %v3343_v59 = vld [vmem:[%s5755_s18 + $0x2b0] sm:$0xff] }
 0x205   : > { %3278 = vst [vmem:[%s6146_s6 + $0x2a8] sm:$0xff] %v3277_v27  ;;  %3280 = vst [vmem:[%s6146_s6 + $0x2b0] sm:$0xff] %v3279_v28  ;;  %v3345_v60 = vld [vmem:[%s5755_s18 + $0x2b8] sm:$0xff]  ;;  %v3347_v61 = vld [vmem:[%s5755_s18 + $0x2c0] sm:$0xff] }
 0x206   : > { %3282 = vst [vmem:[%s6146_s6 + $0x2b8] sm:$0xff] %v3281_v29  ;;  %3284 = vst [vmem:[%s6146_s6 + $0x2c0] sm:$0xff] %v3283_v30  ;;  %v3349_v62 = vld [vmem:[%s5755_s18 + $0x2c8] sm:$0xff]  ;;  %v3351_v63 = vld [vmem:[%s5755_s18 + $0x2d0] sm:$0xff] }
 0x207   : > { %3286 = vst [vmem:[%s6146_s6 + $0x2c8] sm:$0xff] %v3285_v31  ;;  %3288 = vst [vmem:[%s6146_s6 + $0x2d0] sm:$0xff] %v3287_v4  ;;  %v3353_v0 = vld [vmem:[%s5755_s18 + $0x2d8] sm:$0xff]  ;;  %v3355_v1 = vld [vmem:[%s5755_s18 + $0x2e0] sm:$0xff] }
 0x208   : > { %3290 = vst [vmem:[%s6146_s6 + $0x2d8] sm:$0xff] %v3289_v32  ;;  %3292 = vst [vmem:[%s6146_s6 + $0x2e0] sm:$0xff] %v3291_v34  ;;  %v3357_v2 = vld [vmem:[%s5755_s18 + $0x2e8] sm:$0xff]  ;;  %v3359_v3 = vld [vmem:[%s5755_s18 + $0x2f0] sm:$0xff] }
 0x209   : > { %3294 = vst [vmem:[%s6146_s6 + $0x2e8] sm:$0xff] %v3293_v35  ;;  %3296 = vst [vmem:[%s6146_s6 + $0x2f0] sm:$0xff] %v3295_v36  ;;  %v3361_v5 = vld [vmem:[%s5755_s18 + $0x2f8] sm:$0xff]  ;;  %v3363_v6 = vld [vmem:[%s5755_s18 + $0x300] sm:$0xff] }
 0x20a   : > { %3298 = vst [vmem:[%s6146_s6 + $0x2f8] sm:$0xff] %v3297_v37  ;;  %3300 = vst [vmem:[%s6146_s6 + $0x400] sm:$0xff] %v3299_v33  ;;  %v3365_v7 = vld [vmem:[%s5755_s18 + $0x308] sm:$0xff]  ;;  %v3367_v8 = vld [vmem:[%s5755_s18 + $0x310] sm:$0xff] }
 0x20b   : > { %3302 = vst [vmem:[%s6146_s6 + $0x408] sm:$0xff] %v3301_v38  ;;  %3304 = vst [vmem:[%s6146_s6 + $0x410] sm:$0xff] %v3303_v39  ;;  %v3369_v9 = vld [vmem:[%s5755_s18 + $0x318] sm:$0xff]  ;;  %v3371_v10 = vld [vmem:[%s5755_s18 + $0x320] sm:$0xff] }
 0x20c   : > { %3306 = vst [vmem:[%s6146_s6 + $0x418] sm:$0xff] %v3305_v40  ;;  %3308 = vst [vmem:[%s6146_s6 + $0x420] sm:$0xff] %v3307_v41  ;;  %v3373_v11 = vld [vmem:[%s5755_s18 + $0x328] sm:$0xff]  ;;  %v3375_v12 = vld [vmem:[%s5755_s18 + $0x330] sm:$0xff] }
 0x20d   : > { %3310 = vst [vmem:[%s6146_s6 + $0x428] sm:$0xff] %v3309_v42  ;;  %3312 = vst [vmem:[%s6146_s6 + $0x430] sm:$0xff] %v3311_v43  ;;  %v3377_v13 = vld [vmem:[%s5755_s18 + $0x338] sm:$0xff]  ;;  %v3379_v14 = vld [vmem:[%s5755_s18 + $0x340] sm:$0xff] }
 0x20e   : > { %3314 = vst [vmem:[%s6146_s6 + $0x438] sm:$0xff] %v3313_v44  ;;  %3316 = vst [vmem:[%s6146_s6 + $0x440] sm:$0xff] %v3315_v45  ;;  %v3381_v15 = vld [vmem:[%s5755_s18 + $0x348] sm:$0xff]  ;;  %v3383_v16 = vld [vmem:[%s5755_s18 + $0x350] sm:$0xff] }
 0x20f   : > { %3318 = vst [vmem:[%s6146_s6 + $0x448] sm:$0xff] %v3317_v46  ;;  %3320 = vst [vmem:[%s6146_s6 + $0x450] sm:$0xff] %v3319_v47  ;;  %v3385_v17 = vld [vmem:[%s5755_s18 + $0x358] sm:$0xff]  ;;  %v3387_v18 = vld [vmem:[%s5755_s18 + $0x360] sm:$0xff] }
 0x210   : > { %3322 = vst [vmem:[%s6146_s6 + $0x458] sm:$0xff] %v3321_v48  ;;  %3324 = vst [vmem:[%s6146_s6 + $0x460] sm:$0xff] %v3323_v49  ;;  %v3389_v19 = vld [vmem:[%s5755_s18 + $0x368] sm:$0xff]  ;;  %v3391_v20 = vld [vmem:[%s5755_s18 + $0x370] sm:$0xff] }
 0x211   : > { %3326 = vst [vmem:[%s6146_s6 + $0x468] sm:$0xff] %v3325_v50  ;;  %3328 = vst [vmem:[%s6146_s6 + $0x470] sm:$0xff] %v3327_v51  ;;  %v3393_v21 = vld [vmem:[%s5755_s18 + $0x378] sm:$0xff]  ;;  %v3395_v22 = vld [vmem:[%s5755_s18 + $0x380] sm:$0xff] }
 0x212   : > { %3330 = vst [vmem:[%s6146_s6 + $0x478] sm:$0xff] %v3329_v52  ;;  %3332 = vst [vmem:[%s6146_s6 + $0x480] sm:$0xff] %v3331_v53  ;;  %v3397_v23 = vld [vmem:[%s5755_s18 + $0x388] sm:$0xff]  ;;  %v3399_v24 = vld [vmem:[%s5755_s18 + $0x390] sm:$0xff] }
 0x213   : > { %3334 = vst [vmem:[%s6146_s6 + $0x488] sm:$0xff] %v3333_v54  ;;  %3336 = vst [vmem:[%s6146_s6 + $0x490] sm:$0xff] %v3335_v55  ;;  %v3401_v25 = vld [vmem:[%s5755_s18 + $0x398] sm:$0xff]  ;;  %v3403_v26 = vld [vmem:[%s5755_s18 + $0x3a0] sm:$0xff] }
 0x214   : > { %3338 = vst [vmem:[%s6146_s6 + $0x498] sm:$0xff] %v3337_v56  ;;  %3340 = vst [vmem:[%s6146_s6 + $0x4a0] sm:$0xff] %v3339_v57  ;;  %v3405_v27 = vld [vmem:[%s5755_s18 + $0x3a8] sm:$0xff]  ;;  %v3407_v28 = vld [vmem:[%s5755_s18 + $0x3b0] sm:$0xff] }
 0x215   : > { %3342 = vst [vmem:[%s6146_s6 + $0x4a8] sm:$0xff] %v3341_v58  ;;  %3344 = vst [vmem:[%s6146_s6 + $0x4b0] sm:$0xff] %v3343_v59  ;;  %v3409_v29 = vld [vmem:[%s5755_s18 + $0x3b8] sm:$0xff]  ;;  %v3411_v30 = vld [vmem:[%s5755_s18 + $0x3c0] sm:$0xff] }
 0x216   : > { %3346 = vst [vmem:[%s6146_s6 + $0x4b8] sm:$0xff] %v3345_v60  ;;  %3348 = vst [vmem:[%s6146_s6 + $0x4c0] sm:$0xff] %v3347_v61  ;;  %v3413_v31 = vld [vmem:[%s5755_s18 + $0x3c8] sm:$0xff]  ;;  %v3415_v4 = vld [vmem:[%s5755_s18 + $0x3d0] sm:$0xff] }
 0x217   : > { %3350 = vst [vmem:[%s6146_s6 + $0x4c8] sm:$0xff] %v3349_v62  ;;  %3352 = vst [vmem:[%s6146_s6 + $0x4d0] sm:$0xff] %v3351_v63  ;;  %v3417_v32 = vld [vmem:[%s5755_s18 + $0x3d8] sm:$0xff]  ;;  %v3419_v34 = vld [vmem:[%s5755_s18 + $0x3e0] sm:$0xff] }
 0x218   : > { %3354 = vst [vmem:[%s6146_s6 + $0x4d8] sm:$0xff] %v3353_v0  ;;  %3356 = vst [vmem:[%s6146_s6 + $0x4e0] sm:$0xff] %v3355_v1  ;;  %v3421_v35 = vld [vmem:[%s5755_s18 + $0x3e8] sm:$0xff]  ;;  %v3423_v36 = vld [vmem:[%s5755_s18 + $0x3f0] sm:$0xff] }
 0x219   : > { %3358 = vst [vmem:[%s6146_s6 + $0x4e8] sm:$0xff] %v3357_v2  ;;  %3360 = vst [vmem:[%s6146_s6 + $0x4f0] sm:$0xff] %v3359_v3  ;;  %v3425_v37 = vld [vmem:[%s5755_s18 + $0x3f8] sm:$0xff] }
 0x21a   : > { %3362 = vst [vmem:[%s6146_s6 + $0x4f8] sm:$0xff] %v3361_v5  ;;  %3364 = vst [vmem:[%s6146_s6 + $0x600] sm:$0xff] %v3363_v6 }
 0x21b   : > { %3366 = vst [vmem:[%s6146_s6 + $0x608] sm:$0xff] %v3365_v7  ;;  %3368 = vst [vmem:[%s6146_s6 + $0x610] sm:$0xff] %v3367_v8 }
 0x21c   : > { %3370 = vst [vmem:[%s6146_s6 + $0x618] sm:$0xff] %v3369_v9  ;;  %3372 = vst [vmem:[%s6146_s6 + $0x620] sm:$0xff] %v3371_v10 }
 0x21d   : > { %3374 = vst [vmem:[%s6146_s6 + $0x628] sm:$0xff] %v3373_v11  ;;  %3376 = vst [vmem:[%s6146_s6 + $0x630] sm:$0xff] %v3375_v12 }
 0x21e   : > { %3378 = vst [vmem:[%s6146_s6 + $0x638] sm:$0xff] %v3377_v13  ;;  %3380 = vst [vmem:[%s6146_s6 + $0x640] sm:$0xff] %v3379_v14 }
 0x21f   : > { %3382 = vst [vmem:[%s6146_s6 + $0x648] sm:$0xff] %v3381_v15  ;;  %3384 = vst [vmem:[%s6146_s6 + $0x650] sm:$0xff] %v3383_v16 }
 0x220   : > { %3386 = vst [vmem:[%s6146_s6 + $0x658] sm:$0xff] %v3385_v17  ;;  %3388 = vst [vmem:[%s6146_s6 + $0x660] sm:$0xff] %v3387_v18 }
 0x221   : > { %3390 = vst [vmem:[%s6146_s6 + $0x668] sm:$0xff] %v3389_v19  ;;  %3392 = vst [vmem:[%s6146_s6 + $0x670] sm:$0xff] %v3391_v20 }
 0x222   : > { %3394 = vst [vmem:[%s6146_s6 + $0x678] sm:$0xff] %v3393_v21  ;;  %3396 = vst [vmem:[%s6146_s6 + $0x680] sm:$0xff] %v3395_v22 }
 0x223   : > { %3398 = vst [vmem:[%s6146_s6 + $0x688] sm:$0xff] %v3397_v23  ;;  %3400 = vst [vmem:[%s6146_s6 + $0x690] sm:$0xff] %v3399_v24 }
 0x224   : > { %3402 = vst [vmem:[%s6146_s6 + $0x698] sm:$0xff] %v3401_v25  ;;  %3404 = vst [vmem:[%s6146_s6 + $0x6a0] sm:$0xff] %v3403_v26 }
 0x225   : > { %3406 = vst [vmem:[%s6146_s6 + $0x6a8] sm:$0xff] %v3405_v27  ;;  %3408 = vst [vmem:[%s6146_s6 + $0x6b0] sm:$0xff] %v3407_v28 }
 0x226   : > { %3410 = vst [vmem:[%s6146_s6 + $0x6b8] sm:$0xff] %v3409_v29  ;;  %3412 = vst [vmem:[%s6146_s6 + $0x6c0] sm:$0xff] %v3411_v30 }
 0x227   : > { %3414 = vst [vmem:[%s6146_s6 + $0x6c8] sm:$0xff] %v3413_v31  ;;  %3416 = vst [vmem:[%s6146_s6 + $0x6d0] sm:$0xff] %v3415_v4 }
 0x228   : > { %3418 = vst [vmem:[%s6146_s6 + $0x6d8] sm:$0xff] %v3417_v32  ;;  %3420 = vst [vmem:[%s6146_s6 + $0x6e0] sm:$0xff] %v3419_v34 }
 0x229   : > { %3422 = vst [vmem:[%s6146_s6 + $0x6e8] sm:$0xff] %v3421_v35  ;;  %3424 = vst [vmem:[%s6146_s6 + $0x6f0] sm:$0xff] %v3423_v36 }
 0x22a   : > { %3426 = vst [vmem:[%s6146_s6 + $0x6f8] sm:$0xff] %v3425_v37 }
 0x22b PF: > { %s15_s22 = sadd.s32 1, %s4907_s22   ;;  %s6425_s18 = smov %s4895_s19 }
 0x22c   : > { %p12_p9 = scmp.ge.s32.totalorder %s15_s22, 4   ;;  %s6426_s19 = smov %s4981_s28 }
 0x22d   : > { %s6427_s20 = smov %s4903_s21  ;;  %s6428_s21 = smov %s6430_s24 }
 0x22e   :  { %14 = sbr.rel (!%p12_p9) target bundleno = 3 (0x3), region = 130 }

</bundles_post_ra>
